<compile_context>
chip_gen: v7x
topology: tpu7x:2x2x1
jax: 0.10.0
libtpu: 0.0.40
codegen_flags: <defaults>
</compile_context>

<pallas_src>
import functools

import jax
import jax.numpy as jnp
import numpy as np
from jax import lax
from jax.experimental import pallas as pl
from jax.experimental.pallas import tpu as pltpu


# ---------------------------------------------------------------------------
# Fused RRB kernel: one channels-major (C, H*W) image slab per grid step.
# ---------------------------------------------------------------------------
def _rrb_kernel(x_ref, w1_ref, b1_ref, w3a_ref, b3a_ref, w3b_ref, o_ref,
                hpad_ref, tpad_ref, *, H, W, P):
    C, M = o_ref.shape
    f32 = jnp.float32

    # ---- h = w1 @ x + b1  (1x1 conv); channels on sublanes, pixels on lanes -
    h = jnp.dot(w1_ref[...], x_ref[...], preferred_element_type=f32)
    h = h + b1_ref[...].astype(f32)                      # (C,1) lane-broadcast

    # Lane m of a slab is pixel (i, j) = (m // W, m % W).  A horizontal tap
    # dx = +-1 wraps across the image edge at j == 0 / j == W-1 and must
    # contribute zero there; vertical out-of-range taps land in the zero-pad
    # bands of the scratch slab and need no mask.  Masks are hoisted out of
    # the tap loops and pre-broadcast to the slab shape (reused by both convs).
    col = lax.broadcasted_iota(jnp.int32, (1, M), 1) % W
    ok_left = jnp.broadcast_to(col != 0, (C, M))          # pixel (i+dy, j-1) valid
    ok_right = jnp.broadcast_to(col != (W - 1), (C, M))   # pixel (i+dy, j+1) valid

    def conv3x3(pad_ref, w_ref):
        """3x3 same-conv of the (C, M+2P) slab; w_ref is (9C, C) with row
        block k = tap k's (Cout, Cin) weight, k = 3*(ky+1) + (kx+1)."""
        acc = jnp.zeros((C, M), f32)
        for k in range(9):                                # unrolled at trace time
            dy, dx = k // 3 - 1, k % 3 - 1
            s = dy * W + dx
            v = pad_ref[:, P + s:P + s + M]               # lane-shifted (C, M) view
            if dx == -1:
                v = jnp.where(ok_left, v, 0.0)
            elif dx == 1:
                v = jnp.where(ok_right, v, 0.0)
            acc += jnp.dot(w_ref[k * C:(k + 1) * C, :], v,
                           preferred_element_type=f32)
        return acc

    # ---- t = relu(conv3x3(h) + b3a) -----------------------------------------
    # Pad bands are re-zeroed every grid step (cheap, and safe under megacore
    # grid sharding -- never gate this on program_id).
    hpad_ref[:, 0:P] = jnp.zeros((C, P), f32)
    hpad_ref[:, P + M:P + M + P] = jnp.zeros((C, P), f32)
    hpad_ref[:, P:P + M] = h                              # lane-tile-aligned store
    t = conv3x3(hpad_ref, w3a_ref) + b3a_ref[...].astype(f32)
    t = jnp.maximum(t, 0.0)

    # ---- y = conv3x3(t) (no bias); out = relu(h + y) ------------------------
    tpad_ref[:, 0:P] = jnp.zeros((C, P), f32)
    tpad_ref[:, P + M:P + M + P] = jnp.zeros((C, P), f32)
    tpad_ref[:, P:P + M] = t
    y = conv3x3(tpad_ref, w3b_ref)

    # h is only 4 dense f32 vregs in this layout, keeping it live is cheap.
    o_ref[...] = jnp.maximum(h + y, 0.0).astype(o_ref.dtype)


# ---------------------------------------------------------------------------
# Wrapper
# ---------------------------------------------------------------------------
def rrb_forward(x_nchw, params, *, compute_dtype=jnp.float32):
    """RRB forward. x_nchw: (N, C, H, W) like PyTorch. Returns (N, C, H, W)."""
    N, C, H, W = x_nchw.shape
    M = H * W
    sublane = 16 if compute_dtype == jnp.bfloat16 else 8
    assert C % sublane == 0, (
        f"C={C} must be a multiple of {sublane} for dtype {compute_dtype}")

    # NCHW is already channels-major per image: (N, C, H, W) -> (N*C, H*W)
    # is a free reshape (no transpose, no extra HBM pass).
    x = x_nchw.reshape(N * C, M).astype(compute_dtype)

    w1 = params["w1"].astype(compute_dtype)                    # (Cout, Cin)
    b1 = params["b1"].astype(compute_dtype)                    # (C, 1)
    w3a = params["w3a"].reshape(9 * C, C).astype(compute_dtype)  # (ky,kx,Cout)xCin
    b3a = params["b3a"].astype(compute_dtype)                  # (C, 1)
    w3b = params["w3b"].reshape(9 * C, C).astype(compute_dtype)

    # Pad band: needs >= W+1 lanes per side; round up to 128 so all slab
    # stores are lane-tile aligned (tap loads are shifted by design anyway).
    P = ((W + 1 + 127) // 128) * 128
    pad_cols = M + 2 * P

    kernel = functools.partial(_rrb_kernel, H=H, W=W, P=P)

    out = pl.pallas_call(
        kernel,
        out_shape=jax.ShapeDtypeStruct((N * M if False else N * C, M), compute_dtype),
        grid_spec=pltpu.PrefetchScalarGridSpec(
            num_scalar_prefetch=0,
            grid=(N,),                                         # one image per step
            in_specs=[
                pl.BlockSpec((C, M), lambda n: (n, 0)),        # x slab of image n
                pl.BlockSpec((C, C), lambda n: (0, 0)),        # w1 (Cout, Cin)
                pl.BlockSpec((C, 1), lambda n: (0, 0)),        # b1
                pl.BlockSpec((9 * C, C), lambda n: (0, 0)),    # w3a
                pl.BlockSpec((C, 1), lambda n: (0, 0)),        # b3a
                pl.BlockSpec((9 * C, C), lambda n: (0, 0)),    # w3b
            ],
            out_specs=pl.BlockSpec((C, M), lambda n: (n, 0)),  # lane-dense (M=H*W)
            scratch_shapes=[
                pltpu.VMEM((C, pad_cols), jnp.float32),        # zero-padded h slab
                pltpu.VMEM((C, pad_cols), jnp.float32),        # zero-padded t slab
            ],
        ),
        compiler_params=pltpu.CompilerParams(
            dimension_semantics=("parallel",),
            vmem_limit_bytes=32 * 1024 * 1024,   # explicit; fits v7x 64 MiB VMEM
        ),
    )(x, w1, b1, w3a, b3a, w3b)

    return out.reshape(N, C, H, W)               # free reshape back to NCHW


# ---------------------------------------------------------------------------
# Pure-JAX reference (same math via lax.conv) for validation
# ---------------------------------------------------------------------------
def rrb_reference(x_nchw, params):
    x = jnp.transpose(x_nchw, (0, 2, 3, 1))      # NHWC
    C = x.shape[-1]
    dn = ("NHWC", "HWIO", "NHWC")

    w1 = jnp.transpose(params["w1"]).reshape(1, 1, C, C)          # (Cin, Cout)
    h = lax.conv_general_dilated(x, w1, (1, 1), "SAME", dimension_numbers=dn)
    h = h + params["b1"].reshape(1, 1, 1, C)

    w3a = jnp.transpose(params["w3a"], (0, 1, 3, 2))              # (3,3,Cin,Cout)
    t = lax.conv_general_dilated(h, w3a, (1, 1), "SAME", dimension_numbers=dn)
    t = jax.nn.relu(t + params["b3a"].reshape(1, 1, 1, C))

    w3b = jnp.transpose(params["w3b"], (0, 1, 3, 2))
    y = lax.conv_general_dilated(t, w3b, (1, 1), "SAME", dimension_numbers=dn)

    out = jax.nn.relu(h + y)
    return jnp.transpose(out, (0, 3, 1, 2))


# ---------------------------------------------------------------------------
def init_params(key, oc):
    k1, k2, k3, k4, k5 = jax.random.split(key, 5)
    scale = 0.1
    return {
        # 1x1 conv weight as (Cout, Cin): kernel computes h = w1 @ x_slab
        "w1": scale * jax.random.normal(k1, (oc, oc), jnp.float32),
        "b1": scale * jax.random.normal(k2, (oc, 1), jnp.float32),
        # 3x3 conv weights as (ky, kx, Cout, Cin)
        "w3a": scale * jax.random.normal(k3, (3, 3, oc, oc), jnp.float32),
        "b3a": scale * jax.random.normal(k4, (oc, 1), jnp.float32),
        "w3b": scale * jax.random.normal(k5, (3, 3, oc, oc), jnp.float32),
    }


if __name__ == "__main__":
    # Small deterministic problem: batch=2, oc=16 channels, 16x16 spatial.
    key = jax.random.PRNGKey(0)
    kx, kp = jax.random.split(key)
    N, C, H, W = 2, 16, 16, 16
    x = jax.random.normal(kx, (N, C, H, W), jnp.float32)  # NCHW, like PyTorch
    params = init_params(kp, C)

    ref = jax.block_until_ready(rrb_reference(x, params))

    # f32 path: tight check against the lax.conv reference.
    out = jax.block_until_ready(rrb_forward(x, params))
    assert out.shape == (N, C, H, W)
    np.testing.assert_allclose(np.asarray(out), np.asarray(ref),
                               rtol=1e-2, atol=1e-2)

    # bf16 boundary cast: halves HBM bytes for x/weights/out; MXU accumulation,
    # padded slabs and epilogue stay f32.  Looser tolerance vs the f32 ref.
    out_bf16 = jax.block_until_ready(
        rrb_forward(x, params, compute_dtype=jnp.bfloat16)).astype(jnp.float32)
    np.testing.assert_allclose(np.asarray(out_bf16), np.asarray(ref),
                               rtol=5e-2, atol=5e-2)

    print("KERNEL_OK")
</pallas_src>

<mosaic_0001>
module attributes {stable_mosaic.version = 11 : i64} {
  func.func @_rrb_kernel(%arg0: i32, %arg1: memref<16x256xf32, #tpu.memory_space<vmem>>, %arg2: memref<16x16xf32, #tpu.memory_space<vmem>>, %arg3: memref<16x1xf32, #tpu.memory_space<vmem>>, %arg4: memref<144x16xf32, #tpu.memory_space<vmem>>, %arg5: memref<16x1xf32, #tpu.memory_space<vmem>>, %arg6: memref<144x16xf32, #tpu.memory_space<vmem>>, %arg7: memref<16x256xf32, #tpu.memory_space<vmem>>, %arg8: memref<16x512xf32, #tpu.memory_space<vmem>>, %arg9: memref<16x512xf32, #tpu.memory_space<vmem>>) attributes {dimension_semantics = [#tpu.dimension_semantics<parallel>], iteration_bounds = array<i64: 2>, scalar_prefetch = 0 : i64, scratch_operands = 2 : i64, tpu.core_type = #tpu.core_type<tc>, window_params = [{transform_indices = @transform_0, window_bounds = array<i64: 16, 256>}, {pipeline_mode = #tpu.pipeline_mode<synchronous>, transform_indices = @transform_1, window_bounds = array<i64: 16, 16>}, {pipeline_mode = #tpu.pipeline_mode<synchronous>, transform_indices = @transform_2, window_bounds = array<i64: 16, 1>}, {pipeline_mode = #tpu.pipeline_mode<synchronous>, transform_indices = @transform_3, window_bounds = array<i64: 144, 16>}, {pipeline_mode = #tpu.pipeline_mode<synchronous>, transform_indices = @transform_4, window_bounds = array<i64: 16, 1>}, {pipeline_mode = #tpu.pipeline_mode<synchronous>, transform_indices = @transform_5, window_bounds = array<i64: 144, 16>}, {transform_indices = @transform_6, window_bounds = array<i64: 16, 256>}]} {
    %c0 = arith.constant 0 : index
    %c0_0 = arith.constant 0 : index
    %0 = vector.load %arg2[%c0, %c0_0] : memref<16x16xf32, #tpu.memory_space<vmem>>, vector<16x16xf32>
    %c0_1 = arith.constant 0 : index
    %c0_2 = arith.constant 0 : index
    %1 = vector.load %arg1[%c0_1, %c0_2] : memref<16x256xf32, #tpu.memory_space<vmem>>, vector<16x256xf32>
    %cst = arith.constant dense<0.000000e+00> : vector<16x256xf32>
    %2 = tpu.matmul %0, %1, %cst {dimension_numbers = #tpu.dot_dimension_numbers<[1], [0], [0], [1], [0, 0, 1, 1], [], []>} : vector<16x16xf32>, vector<16x256xf32>, vector<16x256xf32> -> vector<16x256xf32>
    %c0_3 = arith.constant 0 : index
    %c0_4 = arith.constant 0 : index
    %3 = vector.load %arg3[%c0_3, %c0_4] : memref<16x1xf32, #tpu.memory_space<vmem>>, vector<16x1xf32>
    %4 = vector.broadcast %3 : vector<16x1xf32> to vector<16x256xf32>
    %5 = arith.addf %2, %4 : vector<16x256xf32>
    %6 = tpu.iota {dimensions = array<i32: 1>} : vector<1x256xi32>
    %c16_i32 = arith.constant 16 : i32
    %c0_i32 = arith.constant 0 : i32
    %7 = arith.cmpi eq, %c16_i32, %c0_i32 : i32
    %c1_i32 = arith.constant 1 : i32
    %8 = arith.select %7, %c1_i32, %c16_i32 : i32
    %9 = vector.broadcast %8 : i32 to vector<1x256xi32>
    %10 = arith.remsi %6, %9 : vector<1x256xi32>
    %c0_i32_5 = arith.constant 0 : i32
    %11 = vector.broadcast %c0_i32_5 : i32 to vector<1x256xi32>
    %12 = arith.cmpi ne, %10, %11 : vector<1x256xi32>
    %c0_i32_6 = arith.constant 0 : i32
    %13 = vector.broadcast %c0_i32_6 : i32 to vector<1x256xi32>
    %14 = arith.cmpi slt, %10, %13 : vector<1x256xi32>
    %c0_i32_7 = arith.constant 0 : i32
    %15 = arith.cmpi slt, %8, %c0_i32_7 : i32
    %16 = vector.broadcast %15 : i1 to vector<1x256xi1>
    %17 = vector.broadcast %16 : vector<1x256xi1> to vector<1x256xi1>
    %18 = arith.xori %14, %17 : vector<1x256xi1>
    %19 = arith.andi %18, %12 : vector<1x256xi1>
    %20 = vector.broadcast %8 : i32 to vector<1x256xi32>
    %21 = arith.addi %10, %20 : vector<1x256xi32>
    %22 = arith.select %19, %21, %10 : vector<1x256xi1>, vector<1x256xi32>
    %c0_i32_8 = arith.constant 0 : i32
    %23 = vector.broadcast %c0_i32_8 : i32 to vector<1x256xi32>
    %24 = arith.cmpi ne, %22, %23 : vector<1x256xi32>
    %25 = vector.shape_cast %24 : vector<1x256xi1> to vector<1x256xi1>
    %26 = vector.broadcast %25 : vector<1x256xi1> to vector<16x256xi1>
    %c15_i32 = arith.constant 15 : i32
    %27 = vector.broadcast %c15_i32 : i32 to vector<1x256xi32>
    %28 = arith.cmpi ne, %22, %27 : vector<1x256xi32>
    %29 = vector.shape_cast %28 : vector<1x256xi1> to vector<1x256xi1>
    %30 = vector.broadcast %29 : vector<1x256xi1> to vector<16x256xi1>
    %cst_9 = arith.constant 0.000000e+00 : f32
    %31 = vector.broadcast %cst_9 : f32 to vector<16x128xf32>
    %c0_10 = arith.constant 0 : index
    %c0_11 = arith.constant 0 : index
    %32 = vector.load %arg8[%c0_10, %c0_11] : memref<16x512xf32, #tpu.memory_space<vmem>>, vector<16x128xf32>
    tpu.vector_store %arg8[%c0_10, %c0_11], %31 {strides = array<i32>} : memref<16x512xf32, #tpu.memory_space<vmem>>, vector<16x128xf32>,
    %cst_12 = arith.constant 0.000000e+00 : f32
    %33 = vector.broadcast %cst_12 : f32 to vector<16x128xf32>
    %c0_13 = arith.constant 0 : index
    %c384 = arith.constant 384 : index
    %34 = vector.load %arg8[%c0_13, %c384] : memref<16x512xf32, #tpu.memory_space<vmem>>, vector<16x128xf32>
    tpu.vector_store %arg8[%c0_13, %c384], %33 {strides = array<i32>} : memref<16x512xf32, #tpu.memory_space<vmem>>, vector<16x128xf32>,
    %c0_14 = arith.constant 0 : index
    %c128 = arith.constant 128 : index
    %35 = vector.load %arg8[%c0_14, %c128] : memref<16x512xf32, #tpu.memory_space<vmem>>, vector<16x256xf32>
    tpu.vector_store %arg8[%c0_14, %c128], %5 {strides = array<i32>} : memref<16x512xf32, #tpu.memory_space<vmem>>, vector<16x256xf32>,
    %cst_15 = arith.constant 0.000000e+00 : f32
    %36 = vector.broadcast %cst_15 : f32 to vector<16x256xf32>
    %c0_16 = arith.constant 0 : index
    %c111 = arith.constant 111 : index
    %37 = vector.load %arg8[%c0_16, %c111] : memref<16x512xf32, #tpu.memory_space<vmem>>, vector<16x256xf32>
    %cst_17 = arith.constant 0.000000e+00 : f32
    %38 = vector.broadcast %cst_17 : f32 to vector<16x256xf32>
    %39 = arith.select %26, %37, %38 : vector<16x256xi1>, vector<16x256xf32>
    %c0_18 = arith.constant 0 : index
    %c0_19 = arith.constant 0 : index
    %40 = vector.load %arg4[%c0_18, %c0_19] : memref<144x16xf32, #tpu.memory_space<vmem>>, vector<16x16xf32>
    %cst_20 = arith.constant dense<0.000000e+00> : vector<16x256xf32>
    %41 = tpu.matmul %40, %39, %cst_20 {dimension_numbers = #tpu.dot_dimension_numbers<[1], [0], [0], [1], [0, 0, 1, 1], [], []>} : vector<16x16xf32>, vector<16x256xf32>, vector<16x256xf32> -> vector<16x256xf32>
    %42 = arith.addf %36, %41 : vector<16x256xf32>
    %c0_21 = arith.constant 0 : index
    %c112 = arith.constant 112 : index
    %43 = vector.load %arg8[%c0_21, %c112] : memref<16x512xf32, #tpu.memory_space<vmem>>, vector<16x256xf32>
    %c16 = arith.constant 16 : index
    %c0_22 = arith.constant 0 : index
    %44 = vector.load %arg4[%c16, %c0_22] : memref<144x16xf32, #tpu.memory_space<vmem>>, vector<16x16xf32>
    %cst_23 = arith.constant dense<0.000000e+00> : vector<16x256xf32>
    %45 = tpu.matmul %44, %43, %cst_23 {dimension_numbers = #tpu.dot_dimension_numbers<[1], [0], [0], [1], [0, 0, 1, 1], [], []>} : vector<16x16xf32>, vector<16x256xf32>, vector<16x256xf32> -> vector<16x256xf32>
    %46 = arith.addf %42, %45 : vector<16x256xf32>
    %c0_24 = arith.constant 0 : index
    %c113 = arith.constant 113 : index
    %47 = vector.load %arg8[%c0_24, %c113] : memref<16x512xf32, #tpu.memory_space<vmem>>, vector<16x256xf32>
    %cst_25 = arith.constant 0.000000e+00 : f32
    %48 = vector.broadcast %cst_25 : f32 to vector<16x256xf32>
    %49 = arith.select %30, %47, %48 : vector<16x256xi1>, vector<16x256xf32>
    %c32 = arith.constant 32 : index
    %c0_26 = arith.constant 0 : index
    %50 = vector.load %arg4[%c32, %c0_26] : memref<144x16xf32, #tpu.memory_space<vmem>>, vector<16x16xf32>
    %cst_27 = arith.constant dense<0.000000e+00> : vector<16x256xf32>
    %51 = tpu.matmul %50, %49, %cst_27 {dimension_numbers = #tpu.dot_dimension_numbers<[1], [0], [0], [1], [0, 0, 1, 1], [], []>} : vector<16x16xf32>, vector<16x256xf32>, vector<16x256xf32> -> vector<16x256xf32>
    %52 = arith.addf %46, %51 : vector<16x256xf32>
    %c0_28 = arith.constant 0 : index
    %c127 = arith.constant 127 : index
    %53 = vector.load %arg8[%c0_28, %c127] : memref<16x512xf32, #tpu.memory_space<vmem>>, vector<16x256xf32>
    %cst_29 = arith.constant 0.000000e+00 : f32
    %54 = vector.broadcast %cst_29 : f32 to vector<16x256xf32>
    %55 = arith.select %26, %53, %54 : vector<16x256xi1>, vector<16x256xf32>
    %c48 = arith.constant 48 : index
    %c0_30 = arith.constant 0 : index
    %56 = vector.load %arg4[%c48, %c0_30] : memref<144x16xf32, #tpu.memory_space<vmem>>, vector<16x16xf32>
    %cst_31 = arith.constant dense<0.000000e+00> : vector<16x256xf32>
    %57 = tpu.matmul %56, %55, %cst_31 {dimension_numbers = #tpu.dot_dimension_numbers<[1], [0], [0], [1], [0, 0, 1, 1], [], []>} : vector<16x16xf32>, vector<16x256xf32>, vector<16x256xf32> -> vector<16x256xf32>
    %58 = arith.addf %52, %57 : vector<16x256xf32>
    %c0_32 = arith.constant 0 : index
    %c128_33 = arith.constant 128 : index
    %59 = vector.load %arg8[%c0_32, %c128_33] : memref<16x512xf32, #tpu.memory_space<vmem>>, vector<16x256xf32>
    %c64 = arith.constant 64 : index
    %c0_34 = arith.constant 0 : index
    %60 = vector.load %arg4[%c64, %c0_34] : memref<144x16xf32, #tpu.memory_space<vmem>>, vector<16x16xf32>
    %cst_35 = arith.constant dense<0.000000e+00> : vector<16x256xf32>
    %61 = tpu.matmul %60, %59, %cst_35 {dimension_numbers = #tpu.dot_dimension_numbers<[1], [0], [0], [1], [0, 0, 1, 1], [], []>} : vector<16x16xf32>, vector<16x256xf32>, vector<16x256xf32> -> vector<16x256xf32>
    %62 = arith.addf %58, %61 : vector<16x256xf32>
    %c0_36 = arith.constant 0 : index
    %c129 = arith.constant 129 : index
    %63 = vector.load %arg8[%c0_36, %c129] : memref<16x512xf32, #tpu.memory_space<vmem>>, vector<16x256xf32>
    %cst_37 = arith.constant 0.000000e+00 : f32
    %64 = vector.broadcast %cst_37 : f32 to vector<16x256xf32>
    %65 = arith.select %30, %63, %64 : vector<16x256xi1>, vector<16x256xf32>
    %c80 = arith.constant 80 : index
    %c0_38 = arith.constant 0 : index
    %66 = vector.load %arg4[%c80, %c0_38] : memref<144x16xf32, #tpu.memory_space<vmem>>, vector<16x16xf32>
    %cst_39 = arith.constant dense<0.000000e+00> : vector<16x256xf32>
    %67 = tpu.matmul %66, %65, %cst_39 {dimension_numbers = #tpu.dot_dimension_numbers<[1], [0], [0], [1], [0, 0, 1, 1], [], []>} : vector<16x16xf32>, vector<16x256xf32>, vector<16x256xf32> -> vector<16x256xf32>
    %68 = arith.addf %62, %67 : vector<16x256xf32>
    %c0_40 = arith.constant 0 : index
    %c143 = arith.constant 143 : index
    %69 = vector.load %arg8[%c0_40, %c143] : memref<16x512xf32, #tpu.memory_space<vmem>>, vector<16x256xf32>
    %cst_41 = arith.constant 0.000000e+00 : f32
    %70 = vector.broadcast %cst_41 : f32 to vector<16x256xf32>
    %71 = arith.select %26, %69, %70 : vector<16x256xi1>, vector<16x256xf32>
    %c96 = arith.constant 96 : index
    %c0_42 = arith.constant 0 : index
    %72 = vector.load %arg4[%c96, %c0_42] : memref<144x16xf32, #tpu.memory_space<vmem>>, vector<16x16xf32>
    %cst_43 = arith.constant dense<0.000000e+00> : vector<16x256xf32>
    %73 = tpu.matmul %72, %71, %cst_43 {dimension_numbers = #tpu.dot_dimension_numbers<[1], [0], [0], [1], [0, 0, 1, 1], [], []>} : vector<16x16xf32>, vector<16x256xf32>, vector<16x256xf32> -> vector<16x256xf32>
    %74 = arith.addf %68, %73 : vector<16x256xf32>
    %c0_44 = arith.constant 0 : index
    %c144 = arith.constant 144 : index
    %75 = vector.load %arg8[%c0_44, %c144] : memref<16x512xf32, #tpu.memory_space<vmem>>, vector<16x256xf32>
    %c112_45 = arith.constant 112 : index
    %c0_46 = arith.constant 0 : index
    %76 = vector.load %arg4[%c112_45, %c0_46] : memref<144x16xf32, #tpu.memory_space<vmem>>, vector<16x16xf32>
    %cst_47 = arith.constant dense<0.000000e+00> : vector<16x256xf32>
    %77 = tpu.matmul %76, %75, %cst_47 {dimension_numbers = #tpu.dot_dimension_numbers<[1], [0], [0], [1], [0, 0, 1, 1], [], []>} : vector<16x16xf32>, vector<16x256xf32>, vector<16x256xf32> -> vector<16x256xf32>
    %78 = arith.addf %74, %77 : vector<16x256xf32>
    %c0_48 = arith.constant 0 : index
    %c145 = arith.constant 145 : index
    %79 = vector.load %arg8[%c0_48, %c145] : memref<16x512xf32, #tpu.memory_space<vmem>>, vector<16x256xf32>
    %cst_49 = arith.constant 0.000000e+00 : f32
    %80 = vector.broadcast %cst_49 : f32 to vector<16x256xf32>
    %81 = arith.select %30, %79, %80 : vector<16x256xi1>, vector<16x256xf32>
    %c128_50 = arith.constant 128 : index
    %c0_51 = arith.constant 0 : index
    %82 = vector.load %arg4[%c128_50, %c0_51] : memref<144x16xf32, #tpu.memory_space<vmem>>, vector<16x16xf32>
    %cst_52 = arith.constant dense<0.000000e+00> : vector<16x256xf32>
    %83 = tpu.matmul %82, %81, %cst_52 {dimension_numbers = #tpu.dot_dimension_numbers<[1], [0], [0], [1], [0, 0, 1, 1], [], []>} : vector<16x16xf32>, vector<16x256xf32>, vector<16x256xf32> -> vector<16x256xf32>
    %84 = arith.addf %78, %83 : vector<16x256xf32>
    %c0_53 = arith.constant 0 : index
    %c0_54 = arith.constant 0 : index
    %85 = vector.load %arg5[%c0_53, %c0_54] : memref<16x1xf32, #tpu.memory_space<vmem>>, vector<16x1xf32>
    %86 = vector.broadcast %85 : vector<16x1xf32> to vector<16x256xf32>
    %87 = arith.addf %84, %86 : vector<16x256xf32>
    %cst_55 = arith.constant 0.000000e+00 : f32
    %88 = vector.broadcast %cst_55 : f32 to vector<16x256xf32>
    %89 = arith.maximumf %87, %88 : vector<16x256xf32>
    %cst_56 = arith.constant 0.000000e+00 : f32
    %90 = vector.broadcast %cst_56 : f32 to vector<16x128xf32>
    %c0_57 = arith.constant 0 : index
    %c0_58 = arith.constant 0 : index
    %91 = vector.load %arg9[%c0_57, %c0_58] : memref<16x512xf32, #tpu.memory_space<vmem>>, vector<16x128xf32>
    tpu.vector_store %arg9[%c0_57, %c0_58], %90 {strides = array<i32>} : memref<16x512xf32, #tpu.memory_space<vmem>>, vector<16x128xf32>,
    %cst_59 = arith.constant 0.000000e+00 : f32
    %92 = vector.broadcast %cst_59 : f32 to vector<16x128xf32>
    %c0_60 = arith.constant 0 : index
    %c384_61 = arith.constant 384 : index
    %93 = vector.load %arg9[%c0_60, %c384_61] : memref<16x512xf32, #tpu.memory_space<vmem>>, vector<16x128xf32>
    tpu.vector_store %arg9[%c0_60, %c384_61], %92 {strides = array<i32>} : memref<16x512xf32, #tpu.memory_space<vmem>>, vector<16x128xf32>,
    %c0_62 = arith.constant 0 : index
    %c128_63 = arith.constant 128 : index
    %94 = vector.load %arg9[%c0_62, %c128_63] : memref<16x512xf32, #tpu.memory_space<vmem>>, vector<16x256xf32>
    tpu.vector_store %arg9[%c0_62, %c128_63], %89 {strides = array<i32>} : memref<16x512xf32, #tpu.memory_space<vmem>>, vector<16x256xf32>,
    %cst_64 = arith.constant 0.000000e+00 : f32
    %95 = vector.broadcast %cst_64 : f32 to vector<16x256xf32>
    %c0_65 = arith.constant 0 : index
    %c111_66 = arith.constant 111 : index
    %96 = vector.load %arg9[%c0_65, %c111_66] : memref<16x512xf32, #tpu.memory_space<vmem>>, vector<16x256xf32>
    %cst_67 = arith.constant 0.000000e+00 : f32
    %97 = vector.broadcast %cst_67 : f32 to vector<16x256xf32>
    %98 = arith.select %26, %96, %97 : vector<16x256xi1>, vector<16x256xf32>
    %c0_68 = arith.constant 0 : index
    %c0_69 = arith.constant 0 : index
    %99 = vector.load %arg6[%c0_68, %c0_69] : memref<144x16xf32, #tpu.memory_space<vmem>>, vector<16x16xf32>
    %cst_70 = arith.constant dense<0.000000e+00> : vector<16x256xf32>
    %100 = tpu.matmul %99, %98, %cst_70 {dimension_numbers = #tpu.dot_dimension_numbers<[1], [0], [0], [1], [0, 0, 1, 1], [], []>} : vector<16x16xf32>, vector<16x256xf32>, vector<16x256xf32> -> vector<16x256xf32>
    %101 = arith.addf %95, %100 : vector<16x256xf32>
    %c0_71 = arith.constant 0 : index
    %c112_72 = arith.constant 112 : index
    %102 = vector.load %arg9[%c0_71, %c112_72] : memref<16x512xf32, #tpu.memory_space<vmem>>, vector<16x256xf32>
    %c16_73 = arith.constant 16 : index
    %c0_74 = arith.constant 0 : index
    %103 = vector.load %arg6[%c16_73, %c0_74] : memref<144x16xf32, #tpu.memory_space<vmem>>, vector<16x16xf32>
    %cst_75 = arith.constant dense<0.000000e+00> : vector<16x256xf32>
    %104 = tpu.matmul %103, %102, %cst_75 {dimension_numbers = #tpu.dot_dimension_numbers<[1], [0], [0], [1], [0, 0, 1, 1], [], []>} : vector<16x16xf32>, vector<16x256xf32>, vector<16x256xf32> -> vector<16x256xf32>
    %105 = arith.addf %101, %104 : vector<16x256xf32>
    %c0_76 = arith.constant 0 : index
    %c113_77 = arith.constant 113 : index
    %106 = vector.load %arg9[%c0_76, %c113_77] : memref<16x512xf32, #tpu.memory_space<vmem>>, vector<16x256xf32>
    %cst_78 = arith.constant 0.000000e+00 : f32
    %107 = vector.broadcast %cst_78 : f32 to vector<16x256xf32>
    %108 = arith.select %30, %106, %107 : vector<16x256xi1>, vector<16x256xf32>
    %c32_79 = arith.constant 32 : index
    %c0_80 = arith.constant 0 : index
    %109 = vector.load %arg6[%c32_79, %c0_80] : memref<144x16xf32, #tpu.memory_space<vmem>>, vector<16x16xf32>
    %cst_81 = arith.constant dense<0.000000e+00> : vector<16x256xf32>
    %110 = tpu.matmul %109, %108, %cst_81 {dimension_numbers = #tpu.dot_dimension_numbers<[1], [0], [0], [1], [0, 0, 1, 1], [], []>} : vector<16x16xf32>, vector<16x256xf32>, vector<16x256xf32> -> vector<16x256xf32>
    %111 = arith.addf %105, %110 : vector<16x256xf32>
    %c0_82 = arith.constant 0 : index
    %c127_83 = arith.constant 127 : index
    %112 = vector.load %arg9[%c0_82, %c127_83] : memref<16x512xf32, #tpu.memory_space<vmem>>, vector<16x256xf32>
    %cst_84 = arith.constant 0.000000e+00 : f32
    %113 = vector.broadcast %cst_84 : f32 to vector<16x256xf32>
    %114 = arith.select %26, %112, %113 : vector<16x256xi1>, vector<16x256xf32>
    %c48_85 = arith.constant 48 : index
    %c0_86 = arith.constant 0 : index
    %115 = vector.load %arg6[%c48_85, %c0_86] : memref<144x16xf32, #tpu.memory_space<vmem>>, vector<16x16xf32>
    %cst_87 = arith.constant dense<0.000000e+00> : vector<16x256xf32>
    %116 = tpu.matmul %115, %114, %cst_87 {dimension_numbers = #tpu.dot_dimension_numbers<[1], [0], [0], [1], [0, 0, 1, 1], [], []>} : vector<16x16xf32>, vector<16x256xf32>, vector<16x256xf32> -> vector<16x256xf32>
    %117 = arith.addf %111, %116 : vector<16x256xf32>
    %c0_88 = arith.constant 0 : index
    %c128_89 = arith.constant 128 : index
    %118 = vector.load %arg9[%c0_88, %c128_89] : memref<16x512xf32, #tpu.memory_space<vmem>>, vector<16x256xf32>
    %c64_90 = arith.constant 64 : index
    %c0_91 = arith.constant 0 : index
    %119 = vector.load %arg6[%c64_90, %c0_91] : memref<144x16xf32, #tpu.memory_space<vmem>>, vector<16x16xf32>
    %cst_92 = arith.constant dense<0.000000e+00> : vector<16x256xf32>
    %120 = tpu.matmul %119, %118, %cst_92 {dimension_numbers = #tpu.dot_dimension_numbers<[1], [0], [0], [1], [0, 0, 1, 1], [], []>} : vector<16x16xf32>, vector<16x256xf32>, vector<16x256xf32> -> vector<16x256xf32>
    %121 = arith.addf %117, %120 : vector<16x256xf32>
    %c0_93 = arith.constant 0 : index
    %c129_94 = arith.constant 129 : index
    %122 = vector.load %arg9[%c0_93, %c129_94] : memref<16x512xf32, #tpu.memory_space<vmem>>, vector<16x256xf32>
    %cst_95 = arith.constant 0.000000e+00 : f32
    %123 = vector.broadcast %cst_95 : f32 to vector<16x256xf32>
    %124 = arith.select %30, %122, %123 : vector<16x256xi1>, vector<16x256xf32>
    %c80_96 = arith.constant 80 : index
    %c0_97 = arith.constant 0 : index
    %125 = vector.load %arg6[%c80_96, %c0_97] : memref<144x16xf32, #tpu.memory_space<vmem>>, vector<16x16xf32>
    %cst_98 = arith.constant dense<0.000000e+00> : vector<16x256xf32>
    %126 = tpu.matmul %125, %124, %cst_98 {dimension_numbers = #tpu.dot_dimension_numbers<[1], [0], [0], [1], [0, 0, 1, 1], [], []>} : vector<16x16xf32>, vector<16x256xf32>, vector<16x256xf32> -> vector<16x256xf32>
    %127 = arith.addf %121, %126 : vector<16x256xf32>
    %c0_99 = arith.constant 0 : index
    %c143_100 = arith.constant 143 : index
    %128 = vector.load %arg9[%c0_99, %c143_100] : memref<16x512xf32, #tpu.memory_space<vmem>>, vector<16x256xf32>
    %cst_101 = arith.constant 0.000000e+00 : f32
    %129 = vector.broadcast %cst_101 : f32 to vector<16x256xf32>
    %130 = arith.select %26, %128, %129 : vector<16x256xi1>, vector<16x256xf32>
    %c96_102 = arith.constant 96 : index
    %c0_103 = arith.constant 0 : index
    %131 = vector.load %arg6[%c96_102, %c0_103] : memref<144x16xf32, #tpu.memory_space<vmem>>, vector<16x16xf32>
    %cst_104 = arith.constant dense<0.000000e+00> : vector<16x256xf32>
    %132 = tpu.matmul %131, %130, %cst_104 {dimension_numbers = #tpu.dot_dimension_numbers<[1], [0], [0], [1], [0, 0, 1, 1], [], []>} : vector<16x16xf32>, vector<16x256xf32>, vector<16x256xf32> -> vector<16x256xf32>
    %133 = arith.addf %127, %132 : vector<16x256xf32>
    %c0_105 = arith.constant 0 : index
    %c144_106 = arith.constant 144 : index
    %134 = vector.load %arg9[%c0_105, %c144_106] : memref<16x512xf32, #tpu.memory_space<vmem>>, vector<16x256xf32>
    %c112_107 = arith.constant 112 : index
    %c0_108 = arith.constant 0 : index
    %135 = vector.load %arg6[%c112_107, %c0_108] : memref<144x16xf32, #tpu.memory_space<vmem>>, vector<16x16xf32>
    %cst_109 = arith.constant dense<0.000000e+00> : vector<16x256xf32>
    %136 = tpu.matmul %135, %134, %cst_109 {dimension_numbers = #tpu.dot_dimension_numbers<[1], [0], [0], [1], [0, 0, 1, 1], [], []>} : vector<16x16xf32>, vector<16x256xf32>, vector<16x256xf32> -> vector<16x256xf32>
    %137 = arith.addf %133, %136 : vector<16x256xf32>
    %c0_110 = arith.constant 0 : index
    %c145_111 = arith.constant 145 : index
    %138 = vector.load %arg9[%c0_110, %c145_111] : memref<16x512xf32, #tpu.memory_space<vmem>>, vector<16x256xf32>
    %cst_112 = arith.constant 0.000000e+00 : f32
    %139 = vector.broadcast %cst_112 : f32 to vector<16x256xf32>
    %140 = arith.select %30, %138, %139 : vector<16x256xi1>, vector<16x256xf32>
    %c128_113 = arith.constant 128 : index
    %c0_114 = arith.constant 0 : index
    %141 = vector.load %arg6[%c128_113, %c0_114] : memref<144x16xf32, #tpu.memory_space<vmem>>, vector<16x16xf32>
    %cst_115 = arith.constant dense<0.000000e+00> : vector<16x256xf32>
    %142 = tpu.matmul %141, %140, %cst_115 {dimension_numbers = #tpu.dot_dimension_numbers<[1], [0], [0], [1], [0, 0, 1, 1], [], []>} : vector<16x16xf32>, vector<16x256xf32>, vector<16x256xf32> -> vector<16x256xf32>
    %143 = arith.addf %137, %142 : vector<16x256xf32>
    %144 = arith.addf %5, %143 : vector<16x256xf32>
    %cst_116 = arith.constant 0.000000e+00 : f32
    %145 = vector.broadcast %cst_116 : f32 to vector<16x256xf32>
    %146 = arith.maximumf %144, %145 : vector<16x256xf32>
    %c0_117 = arith.constant 0 : index
    %c0_118 = arith.constant 0 : index
    %147 = vector.load %arg7[%c0_117, %c0_118] : memref<16x256xf32, #tpu.memory_space<vmem>>, vector<16x256xf32>
    tpu.vector_store %arg7[%c0_117, %c0_118], %146 {strides = array<i32>} : memref<16x256xf32, #tpu.memory_space<vmem>>, vector<16x256xf32>,
    return
  }
  func.func @transform_0(%arg0: i32) -> (i32, i32) {
    %c0_i32 = arith.constant 0 : i32
    %c0_i32_0 = arith.constant 0 : i32
    return %arg0, %c0_i32 : i32, i32
  }
  func.func @transform_1(%arg0: i32) -> (i32, i32) {
    %c0_i32 = arith.constant 0 : i32
    %c0_i32_0 = arith.constant 0 : i32
    %c0_i32_1 = arith.constant 0 : i32
    return %c0_i32, %c0_i32_0 : i32, i32
  }
  func.func @transform_2(%arg0: i32) -> (i32, i32) {
    %c0_i32 = arith.constant 0 : i32
    %c0_i32_0 = arith.constant 0 : i32
    %c0_i32_1 = arith.constant 0 : i32
    return %c0_i32, %c0_i32_0 : i32, i32
  }
  func.func @transform_3(%arg0: i32) -> (i32, i32) {
    %c0_i32 = arith.constant 0 : i32
    %c0_i32_0 = arith.constant 0 : i32
    %c0_i32_1 = arith.constant 0 : i32
    return %c0_i32, %c0_i32_0 : i32, i32
  }
  func.func @transform_4(%arg0: i32) -> (i32, i32) {
    %c0_i32 = arith.constant 0 : i32
    %c0_i32_0 = arith.constant 0 : i32
    %c0_i32_1 = arith.constant 0 : i32
    return %c0_i32, %c0_i32_0 : i32, i32
  }
  func.func @transform_5(%arg0: i32) -> (i32, i32) {
    %c0_i32 = arith.constant 0 : i32
    %c0_i32_0 = arith.constant 0 : i32
    %c0_i32_1 = arith.constant 0 : i32
    return %c0_i32, %c0_i32_0 : i32, i32
  }
  func.func @transform_6(%arg0: i32) -> (i32, i32) {
    %c0_i32 = arith.constant 0 : i32
    %c0_i32_0 = arith.constant 0 : i32
    return %arg0, %c0_i32 : i32, i32
  }
}

</mosaic_0001>

<bundles_post_ra>
// kernel: tpu_custom_call.1
= control target key start
LH: loop header
LB: loop body
LE: loop exit
PB: predicated region body
PF: predicated region fallthrough
CT: control target
= control target key end

     0   :  { %11 = vsyncpa [#allocation5], 0  ;;  %s3753_s0 = inlined_call_operand.vmem [shape: f32[32,256], index: 0, kind: input, shape index: {}]   ;;  %s3754_s1 = inlined_call_operand.vmem [shape: f32[16,16], index: 1, kind: input, shape index: {}]   ;;  %s3755_s2 = inlined_call_operand.vmem [shape: f32[16,1], index: 2, kind: input, shape index: {}]   ;;  %s3756_s3 = inlined_call_operand.vmem [shape: f32[144,16], index: 3, kind: input, shape index: {}]   ;;  %s3757_s4 = inlined_call_operand.vmem [shape: f32[16,1], index: 4, kind: input, shape index: {}]   ;;  %s3758_s5 = inlined_call_operand.vmem [shape: f32[144,16], index: 5, kind: input, shape index: {}]   ;;  %s3759_s6 = inlined_call_operand.hbm [shape: f32[32,256], index: 6, kind: output, shape index: {}]  }
   0x1   :  { %13 = vsyncpa [#allocation5 + $0x1], 0  ;;  %s3203_s21 = smov 0   ;;  %s3205_s22 = smov 0  }
   0x2   :  { %s3207_s23 = smov 0   ;;  %s3209_s24 = smov 0  }
   0x3 LB: > { %s3224_s25 = sadd.s32 4294967295, %s3154_s24   ;;  %s2531_s26 = sadd.s32 4294967294, %s3154_s24   ;;  %s3154_s24 = sphi %s3209_s24, %s3775_s24   ;;  %s3150_s23 = sphi %s3207_s23, %s3774_s23   ;;  %s3146_s22 = sphi %s3205_s22, %s3773_s22   ;;  %s3142_s21 = sphi %s3203_s21, %s3772_s21  }
   0x4   : > { %s3228_s27 = sadd.s32 1, %s3154_s24   ;;  %s157_s28 = sadd.s32 1, %s3150_s23 }
   0x5   : > { %s154_s29 = ssub.s32 %s3154_s24, %s3228_s27  ;;  %p167_p0 = scmp.ne.s32.totalorder %s3150_s23, %s3146_s22 }
   0x6   : > { %p155_p1 = scmp.eq.s32.totalorder %s154_s29, 0  ;;  %p168_p2 = scmp.eq.s32.totalorder %s3224_s25, 1 }
   0x7   : > { %p173_p3 = scmp.ne.s32.totalorder %s3146_s22, %s3142_s21  ;;  %p174_p4 = scmp.eq.s32.totalorder %s2531_s26, 1 }
   0x8   : > { %s3239_s30 = scalar_select %p155_p1, %s3150_s23, %s157_s28  }
   0x9   : > { %p3241_p5 = por %p168_p2, %p167_p0  ;;  %p3245_p6 = por %p174_p4, %p173_p3 }
   0xa   : > { %p2534_p7 = scmp.ge.s32.totalorder %s3154_s24, 1  ;;  %p217_p8 = scmp.lt.s32.totalorder %s3154_s24, 3 }
   0xc   : > { %p218_p9 = pnand %p2534_p7, %p217_p8 }
   0xd   : > { %s2536_s9 = sshll.u32 (!%p218_p9), %s3224_s25, 1  ;;  %v3156_v0 = vmov (!%p218_p9), 0.0   ;;  %v262_v1 = vld [vmem:[%s3755_s2] sm:$0xff] (!%p218_p9)  ;;  %v3157_v2 = vmov (!%p218_p9), 0   ;;  %v263_v3 = vld [vmem:[%s3755_s2 + $0x8] sm:$0xff] (!%p218_p9)  ;;  %vm274_vm0 = vcmask (!%p218_p9), 130048   ;;  %v358_v29 = vlaneseq (!%p218_p9) }
   0xe   : > { %221 = sbr.rel (%p218_p9) target bundleno = 1087 (0x43f), region = 44  ;;  %p249_p10 = scmp.lt.s32.totalorder (!%p218_p9), %s2536_s9, 3  ;;  %345 = vmatprep.mubr.f32.mxu0 (!%p218_p9), %v3156_v0  ;;  %351 = vmatprep.mubr.f32.mxu1 (!%p218_p9), %v3156_v0  ;;  %v256_v10 = vld [vmem:[%s3754_s1] sm:$0xff] (!%p218_p9)  ;;  %v257_v11 = vld [vmem:[%s3754_s1 + $0x8] sm:$0xff] (!%p218_p9)  ;;  %vm429_vm1 = vcmask (!%p218_p9), 138240   ;;  %v444_v59 = vld [vmem:[%s3756_s3 + $0x10] sm:$0xff] (!%p218_p9) }
   0xf   : > { %2850 = vset.pattern.permute.xlu0 (!%p218_p9), %v3157_v2  ;;  %2971 = vset.pattern.permute.xlu1 (!%p218_p9), %v3157_v2  ;;  %s3158_s28 = smov (!%p218_p9), 16   ;;  %s3159_s29 = smov (!%p218_p9), 17   ;;  %v1413_v27 = vld [vmem:[%s3757_s4] sm:$0xff] (!%p218_p9)  ;;  %v1414_v28 = vld [vmem:[%s3757_s4 + $0x8] sm:$0xff] (!%p218_p9)  ;;  %v359_v31 = vand.u32 (!%p218_p9), 127, %v358_v29  ;;  %vm644_vm5 = vcmask (!%p218_p9), 121856  }
  0x10   : > { %266 = vperm.xlu0 (!%p218_p9), %2850, %v262_v1   ;;  %s3161_s10 = smov (!%p218_p9), 1   ;;  %s3162_s11 = smov (!%p218_p9), 127   ;;  %vm758_vm10 = vcmask (!%p218_p9), 7168   ;;  %vm973_vm12 = vcmask (!%p218_p9), 1039360   ;;  %vm1087_vm13 = vcmask (!%p218_p9), 924672   ;;  %vm1203_vm14 = vcmask (!%p218_p9), 916480  }
  0x11   : > { %s3163_s12 = smov (!%p218_p9), 113   ;;  %s3164_s13 = smov (!%p218_p9), 112   ;;  %v360_v34 = vadd.s32 (!%p218_p9), 128, %v359_v31  ;;  %v365_v55 = vand.u32 (!%p218_p9), 15, %v359_v31  ;;  %vm1311_vm15 = vcmask (!%p218_p9), 908288   ;;  %v2354_v31 = vld [vmem:[%s3758_s5 + $0x88] sm:$0xff] (!%p218_p9) }
  0x12   : > { %s245_s26 = sand.u32 (!%p218_p9), 1, %s3146_s22   ;;  %s2633_s18 = sshll.u32 (!%p218_p9), %s3224_s25, 9 }
  0x13   : > { %v372_v41 = vand.u32 (!%p218_p9), 15, %v360_v34  ;;  %vm385_vm4 = vcmp.ne.s32.totalorder (!%p218_p9), %v365_v55, 0  ;;  %vm3351_vm8 = vcmp.ne.s32.totalorder (!%p218_p9), %v365_v55, 15  ;;  %s2535_s15 = sshll.u32 (!%p218_p9), %s245_s26, 5 }
  0x14   : > { %271 = vperm.xlu0 (!%p218_p9), %2850, %v263_v3   ;;  %vm3347_vm6 = vmpackc.low (!%p218_p9), %vm385_vm4, %vm385_vm4  ;;  %s247_s16 = scalar_lea.vmem (!%p218_p9), [#allocation4], %s2535_s15 }
  0x15   : > { %s3777_s9 = smov (!%p249_p10, %s2536_s9), 3  ;;  %vm386_vm2 = vcmp.ne.s32.totalorder %v372_v41, 0  ;;  %vm392_vm7 = vcmp.ne.s32.totalorder %v372_v41, 15  ;;  %vm3373_vm11 = vmpackc.low %vm3351_vm8, %vm3351_vm8 }
  0x16   : > { %s2631_s14 = sshll.u32 %s3777_s9, 4  ;;  %s3160_s9 = smov 15   ;;  %vm3334_vm3 = vmpackc.low %vm386_vm2, %vm386_vm2 }
  0x17   : > { %s253_s17 = scalar_lea.vmem %s3753_s0, %s2631_s14  ;;  %s3165_s14 = smov 111   ;;  %vm3366_vm9 = vmpackc.low %vm392_vm7, %vm392_vm7 }
  0x18   : > { %v259_v4 = vld [vmem:[%s253_s17 + $0x8] sm:$0xff]  ;;  %v261_v5 = vld [vmem:[%s253_s17 + $0x18] sm:$0xff]  ;;  %v258_v6 = vld [vmem:[%s253_s17] sm:$0xff]  ;;  %2862 = vrot.lane.b32.xlu0 %v3156_v0, %s3158_s28 }
  0x19   : > { %v2634_v7 = vpack.c.bf16 %v261_v5, %v259_v4  ;;  %v260_v8 = vld [vmem:[%s253_s17 + $0x10] sm:$0xff]  ;;  %s2469_s17 = sshll.u32 %s247_s16, 4  ;;  %s3704_s17 = int_to_ptr.vmem [resolvable:$true] %s2469_s17 }
  0x1a   : > { %v2636_v9 = vpack.c.bf16 %v260_v8, %v258_v6  ;;  %v445_v8 = vld [vmem:[%s3756_s3 + $0x18] sm:$0xff]  ;;  %s3092_s25 = scalar_lea.vmem %s3704_s17, 512 }
  0x1b   : > { %2635 = vmatprep.subr.bf16.mxu0 %v2634_v7  ;;  %2734 = vmatprep.subr.bf16.mxu1 %v2634_v7  ;;  %p3093_p11 = scmp.ne.s32.totalorder %s3704_s17, %s3092_s25 }
  0x1c   : > { %2637 = vmatpush1.bf16.msra.mxu0 %v2636_v9  ;;  %2735 = vmatpush1.bf16.msra.mxu1 %v2636_v9 }
  0x1d   : > { %p3094_p12 = pnand %p3093_p11, %p3241_p5 }
  0x1f   : > { %2539 = vmatmul.mubr.msk.f32.vlgmr.msra.gmra.mrb[0].mxu0 %vm274_vm0, %v256_v10  ;;  %2540 = vmatmul.mubr.msk.f32.vlgmr.msra.gmra.mrb[0].mxu1 %vm274_vm0, %v257_v11  ;;  %p3095_p13 = pneg %p3094_p12 }
  0x20   : > { %536 = vmatprep.mubr.f32.mxu1 %v3156_v0  ;;  %1571 = vmatprep.mubr.f32.mxu0 %v3156_v0 }
  0x8f   : > { %v267_v12 = vpop.permute.xlu0 %266 }
  0x93   : > { %v272_v13 = vpop.permute.xlu0 %271 }
  0x97   : > { %v2863_v30 = vpop.permute.xlu0 %2862 }
  0x98   : > { %v2865_v35 = vunpack.i.h.bf16 %v2863_v30  ;;  %v2864_v36 = vunpack.i.l.bf16 %v2863_v30 }
  0xf2   : > { %v347_v14 = vpop.f32.mrb[0].mxu0  ;;  %v353_v15 = vpop.f32.mrb[0].mxu1 }
  0xf3   : > { %v3275_v16 = vadd.f32 %v347_v14, %v267_v12  ;;  %v3277_v17 = vadd.f32 %v353_v15, %v272_v13  ;;  %v349_v18 = vpop.f32.mrb[1].mxu0  ;;  %v355_v19 = vpop.f32.mrb[1].mxu1 }
  0xf4   : > { %v3279_v20 = vadd.f32 %v349_v18, %v267_v12  ;;  %v3281_v21 = vadd.f32 %v355_v19, %v272_v13  ;;  %v2131_v12 = vld [vmem:[%s3758_s5 + $0x60] sm:$0xff] }
  0xf5   : > { %v2921_v25 = vpack.i.bf16 %v3277_v17, %v3275_v16 }
  0xf6   : > { %v2871_v22 = vpack.i.bf16 %v3281_v21, %v3277_v17  ;;  %v2851_v23 = vpack.i.bf16 %v3279_v20, %v3275_v16  ;;  %v2911_v24 = vpack.i.bf16 %v3156_v0, %v3279_v20  ;;  %v2931_v26 = vpack.i.bf16 %v3156_v0, %v3281_v21 }
  0xf8   : > { %2872 = vrot.lane.b32.xlu0 %v2871_v22, %s3159_s29  ;;  %2852 = vrot.lane.b32.xlu1 %v2851_v23, %s3158_s28 }
  0xfc   : > { %2882 = vrot.lane.b32.xlu0 %v2851_v23, %s3160_s9  ;;  %2857 = vrot.lane.b32.xlu1 %v2871_v22, %s3158_s28 }
 0x100   : > { %2892 = vrot.lane.b32.xlu0 %v3156_v0, %s3160_s9  ;;  %2867 = vrot.lane.b32.xlu1 %v2851_v23, %s3159_s29 }
 0x104   : > { %2902 = vrot.lane.b32.xlu0 %v2871_v22, %s3161_s10  ;;  %2877 = vrot.lane.b32.xlu1 %v3156_v0, %s3159_s29 }
 0x108   : > { %2912 = vrot.lane.b32.xlu0 %v2911_v24, %s3162_s11  ;;  %2887 = vrot.lane.b32.xlu1 %v2871_v22, %s3160_s9 }
 0x10c   : > { %2922 = vrot.lane.b32.xlu0 %v2921_v25, %s3162_s11  ;;  %2897 = vrot.lane.b32.xlu1 %v2851_v23, %s3161_s10 }
 0x110   : > { %2932 = vrot.lane.b32.xlu0 %v2931_v26, %s3163_s12  ;;  %2907 = vrot.lane.b32.xlu1 %v3156_v0, %s3161_s10 }
 0x114   : > { %2942 = vrot.lane.b32.xlu0 %v2911_v24, %s3164_s13  ;;  %2917 = vrot.lane.b32.xlu1 %v2931_v26, %s3162_s11 }
 0x118   : > { %2952 = vrot.lane.b32.xlu0 %v2921_v25, %s3164_s13  ;;  %2927 = vrot.lane.b32.xlu1 %v2911_v24, %s3163_s12 }
 0x11c   : > { %2962 = vrot.lane.b32.xlu0 %v2931_v26, %s3165_s14  ;;  %2937 = vrot.lane.b32.xlu1 %v2921_v25, %s3163_s12 }
 0x120   : > { %1417 = vperm.xlu0 %2850, %v1413_v27   ;;  %2947 = vrot.lane.b32.xlu1 %v2931_v26, %s3164_s13  ;;  %v442_v26 = vld [vmem:[%s3756_s3] sm:$0xff]  ;;  %v2221_v27 = vld [vmem:[%s3758_s5 + $0x78] sm:$0xff] }
 0x124   : > { %2957 = vrot.lane.b32.xlu1 %v2911_v24, %s3165_s14 }
 0x128   : > { %2967 = vrot.lane.b32.xlu1 %v2921_v25, %s3165_s14 }
 0x12c   : > { %1422 = vperm.xlu1 %2971, %v1414_v28  }
 0x16a   : > { %v2873_v32 = vpop.permute.xlu0 %2872  ;;  %v2853_v33 = vpop.permute.xlu1 %2852 }
 0x16b   : > { %v2855_v37 = vunpack.i.h.bf16 %v2853_v33  ;;  %v2854_v38 = vunpack.i.l.bf16 %v2853_v33  ;;  %v2875_v44 = vunpack.i.h.bf16 %v2873_v32  ;;  %v2874_v45 = vunpack.i.l.bf16 %v2873_v32 }
 0x16d   : > { %v458_v46 = vsel %vm274_vm0, %v2864_v36, %v2854_v38  ;;  %v459_v48 = vsel %vm274_vm0, %v2854_v38, %v2855_v37  ;;  %v433_v57 = vsel %vm429_vm1, %v2874_v45, %v2875_v44  ;;  %v443_v36 = vld [vmem:[%s3756_s3 + $0x8] sm:$0xff]  ;;  %v657_v44 = vld [vmem:[%s3756_s3 + $0x20] sm:$0xff] }
 0x16e   : > { %v2883_v39 = vpop.permute.xlu0 %2882  ;;  %v2858_v40 = vpop.permute.xlu1 %2857 }
 0x16f   : > { %v2860_v42 = vunpack.i.h.bf16 %v2858_v40  ;;  %v2859_v43 = vunpack.i.l.bf16 %v2858_v40  ;;  %v2885_v2 = vunpack.i.h.bf16 %v2883_v39  ;;  %v2884_v3 = vunpack.i.l.bf16 %v2883_v39 }
 0x171   : > { %v460_v47 = vsel %vm274_vm0, %v2865_v35, %v2859_v43  ;;  %v461_v49 = vsel %vm274_vm0, %v2859_v43, %v2860_v42  ;;  %v646_v18 = vsel %vm644_vm5, %v2884_v3, %v2885_v2  ;;  %v772_v2 = vld [vmem:[%s3756_s3 + $0x38] sm:$0xff] }
 0x172   : > { %v2640_v50 = vpack.c.bf16 %v460_v47, %v458_v46  ;;  %v2868_v51 = vpop.permute.xlu1 %2867  ;;  %v2638_v52 = vpack.c.bf16 %v461_v49, %v459_v48  ;;  %v2893_v56 = vpop.permute.xlu0 %2892  ;;  %v2660_v48 = vpack.c.bf16 %v3281_v21, %v3279_v20 }
 0x173   : > { %v2870_v53 = vunpack.i.h.bf16 %v2868_v51  ;;  %v2869_v54 = vunpack.i.l.bf16 %v2868_v51  ;;  %v2894_v4 = vunpack.i.l.bf16 %v2893_v56  ;;  %v2895_v5 = vunpack.i.h.bf16 %v2893_v56  ;;  %v658_v51 = vld [vmem:[%s3756_s3 + $0x28] sm:$0xff]  ;;  %v771_v56 = vld [vmem:[%s3756_s3 + $0x30] sm:$0xff] }
 0x174   : > { %2639 = vmatprep.subr.bf16.mxu1 %v2638_v52 }
 0x175   : > { %v431_v58 = vsel %vm429_vm1, %v2869_v54, %v2870_v53  ;;  %2641 = vmatpush1.bf16.msra.mxu1 %v2640_v50  ;;  %v645_v19 = vsel %vm644_vm5, %v2894_v4, %v2884_v3 }
 0x176   : > { %v2642_v61 = vpack.c.bf16 %v433_v57, %v431_v58  ;;  %v2878_v62 = vpop.permute.xlu1 %2877  ;;  %v2903_v9 = vpop.permute.xlu0 %2902 }
 0x177   : > { %v2880_v63 = vunpack.i.h.bf16 %v2878_v62  ;;  %v2879_v1 = vunpack.i.l.bf16 %v2878_v62  ;;  %v2905_v22 = vunpack.i.h.bf16 %v2903_v9  ;;  %v2904_v23 = vunpack.i.l.bf16 %v2903_v9 }
 0x178   : > { %2541 = vmatmul.mubr.msk.f32.vlgmr.msra.gmra.mrb[2].mxu1 %vm274_vm0, %v444_v59  ;;  %2644 = vmatprep.subr.msk.bf16.mxu1 %vm3334_vm3, %v2642_v61  ;;  %v2662_v59 = vpack.c.bf16 %v3277_v17, %v3275_v16 }
 0x179   : > { %v432_v6 = vsel %vm429_vm1, %v2880_v63, %v2874_v45  ;;  %v430_v7 = vsel %vm429_vm1, %v2879_v1, %v2869_v54  ;;  %542 = vmatprep.mubr.f32.mxu1 %v3156_v0  ;;  %v762_v34 = vsel %vm758_vm10, %v2904_v23, %v2905_v22 }
 0x17a   : > { %v2645_v10 = vpack.c.bf16 %v432_v6, %v430_v7  ;;  %v2888_v11 = vpop.permute.xlu1 %2887  ;;  %v2913_v37 = vpop.permute.xlu0 %2912 }
 0x17b   : > { %v2890_v13 = vunpack.i.h.bf16 %v2888_v11  ;;  %v2889_v14 = vunpack.i.l.bf16 %v2888_v11  ;;  %v2915_v53 = vunpack.i.h.bf16 %v2913_v37  ;;  %v2914_v54 = vunpack.i.l.bf16 %v2913_v37 }
 0x17c   : > { %2542 = vmatmul.mubr.msk.f32.gmra.mrb[4].mxu1 %vm274_vm0, %v445_v8 }
 0x17d   : > { %v647_v24 = vsel %vm644_vm5, %v2895_v5, %v2889_v14  ;;  %v648_v25 = vsel %vm644_vm5, %v2889_v14, %v2890_v13  ;;  %2647 = vmatpush1.bf16.msk.msra.mxu1 %vm3347_vm6, %v2645_v10  ;;  %619 = vmatprep.mubr.f32.mxu1 %v3156_v0  ;;  %v975_v58 = vsel %vm973_vm12, %v2914_v54, %v2915_v53  ;;  %v860_v10 = vld [vmem:[%s3756_s3 + $0x40] sm:$0xff] }
 0x17e   : > { %v2648_v28 = vpack.c.bf16 %v648_v25, %v646_v18  ;;  %v2651_v29 = vpack.c.bf16 %v647_v24, %v645_v19  ;;  %v2898_v30 = vpop.permute.xlu1 %2897  ;;  %v2923_v47 = vpop.permute.xlu0 %2922  ;;  %v861_v25 = vld [vmem:[%s3756_s3 + $0x48] sm:$0xff] }
 0x17f   : > { %v2900_v32 = vunpack.i.h.bf16 %v2898_v30  ;;  %v2899_v33 = vunpack.i.l.bf16 %v2898_v30  ;;  %v2925_v3 = vunpack.i.h.bf16 %v2923_v47  ;;  %v2924_v4 = vunpack.i.l.bf16 %v2923_v47 }
 0x180   : > { %2547 = vmatmul.mubr.msk.f32.vlgmr.msra.gmra.mrb[2].mxu1 %vm274_vm0, %v442_v26  ;;  %2650 = vmatprep.subr.msk.bf16.mxu1 %vm3366_vm9, %v2648_v28 }
 0x181   : > { %v760_v35 = vsel %vm758_vm10, %v2899_v33, %v2900_v32  ;;  %2653 = vmatpush1.bf16.msk.msra.mxu1 %vm3373_vm11, %v2651_v29  ;;  %625 = vmatprep.mubr.f32.mxu1 %v3156_v0  ;;  %v974_v11 = vsel %vm973_vm12, %v2924_v4, %v2914_v54 }
 0x182   : > { %v2654_v38 = vpack.c.bf16 %v762_v34, %v760_v35  ;;  %v2908_v39 = vpop.permute.xlu1 %2907  ;;  %v2933_v57 = vpop.permute.xlu0 %2932 }
 0x183   : > { %v2910_v40 = vunpack.i.h.bf16 %v2908_v39  ;;  %v2909_v41 = vunpack.i.l.bf16 %v2908_v39  ;;  %v2935_v5 = vunpack.i.h.bf16 %v2933_v57  ;;  %v2934_v6 = vunpack.i.l.bf16 %v2933_v57  ;;  %v1101_v57 = vld [vmem:[%s3756_s3 + $0x68] sm:$0xff] }
 0x184   : > { %2548 = vmatmul.mubr.msk.f32.gmra.mrb[4].mxu1 %vm274_vm0, %v443_v36  ;;  %2656 = vmatprep.subr.msk.bf16.mxu1 %vm3334_vm3, %v2654_v38 }
 0x185   : > { %v761_v42 = vsel %vm758_vm10, %v2910_v40, %v2904_v23  ;;  %v759_v43 = vsel %vm758_vm10, %v2909_v41, %v2899_v33  ;;  %729 = vmatprep.mubr.f32.mxu1 %v3156_v0  ;;  %v1091_v14 = vsel %vm1087_vm13, %v2934_v6, %v2935_v5  ;;  %v986_v33 = vld [vmem:[%s3756_s3 + $0x50] sm:$0xff] }
 0x186   : > { %v2657_v45 = vpack.c.bf16 %v761_v42, %v759_v43  ;;  %v2918_v46 = vpop.permute.xlu1 %2917  ;;  %v2943_v7 = vpop.permute.xlu0 %2942  ;;  %v987_v42 = vld [vmem:[%s3756_s3 + $0x58] sm:$0xff] }
 0x187   : > { %v2920_v49 = vunpack.i.h.bf16 %v2918_v46  ;;  %v2919_v50 = vunpack.i.l.bf16 %v2918_v46  ;;  %v2945_v28 = vunpack.i.h.bf16 %v2943_v7  ;;  %v2944_v29 = vunpack.i.l.bf16 %v2943_v7 }
 0x188   : > { %2553 = vmatmul.mubr.msk.f32.vlgmr.msra.gmra.mrb[2].mxu1 %vm274_vm0, %v657_v44 }
 0x189   : > { %2659 = vmatpush1.bf16.msk.msra.mxu1 %vm3347_vm6, %v2657_v45  ;;  %735 = vmatprep.mubr.f32.mxu1 %v3156_v0  ;;  %v977_v55 = vsel %vm973_vm12, %v2919_v50, %v2920_v49  ;;  %v976_v8 = vsel %vm973_vm12, %v2925_v3, %v2919_v50  ;;  %v1205_v37 = vsel %vm1203_vm14, %v2944_v29, %v2945_v28  ;;  %v1100_v50 = vld [vmem:[%s3756_s3 + $0x60] sm:$0xff] }
 0x18a   : > { %2661 = vmatprep.subr.bf16.mxu1 %v2660_v48  ;;  %v2928_v52 = vpop.permute.xlu1 %2927  ;;  %v2664_v61 = vpack.c.bf16 %v977_v55, %v975_v58  ;;  %v2667_v15 = vpack.c.bf16 %v976_v8, %v974_v11  ;;  %v2953_v26 = vpop.permute.xlu0 %2952 }
 0x18b   : > { %v2930_v63 = vunpack.i.h.bf16 %v2928_v52  ;;  %v2929_v1 = vunpack.i.l.bf16 %v2928_v52  ;;  %v2955_v43 = vunpack.i.h.bf16 %v2953_v26  ;;  %v2954_v44 = vunpack.i.l.bf16 %v2953_v26 }
 0x18c   : > { %2554 = vmatmul.mubr.msk.f32.gmra.mrb[4].mxu1 %vm274_vm0, %v658_v51 }
 0x18d   : > { %843 = vmatprep.mubr.f32.mxu1 %v3156_v0  ;;  %v1089_v9 = vsel %vm1087_vm13, %v2929_v1, %v2930_v63  ;;  %v1204_v51 = vsel %vm1203_vm14, %v2954_v44, %v2944_v29  ;;  %v1190_v63 = vld [vmem:[%s3756_s3 + $0x78] sm:$0xff] }
 0x18e   : > { %v2938_v62 = vpop.permute.xlu1 %2937  ;;  %v2670_v18 = vpack.c.bf16 %v1091_v14, %v1089_v9  ;;  %v2963_v38 = vpop.permute.xlu0 %2962 }
 0x18f   : > { %v2940_v19 = vunpack.i.h.bf16 %v2938_v62  ;;  %v2939_v22 = vunpack.i.l.bf16 %v2938_v62  ;;  %v2965_v45 = vunpack.i.h.bf16 %v2963_v38  ;;  %v2964_v46 = vunpack.i.l.bf16 %v2963_v38 }
 0x190   : > { %2559 = vmatmul.mubr.msk.f32.vlgmr.msra.gmra.mrb[2].mxu1 %vm274_vm0, %v771_v56 }
 0x191   : > { %2663 = vmatpush1.bf16.msra.mxu1 %v2662_v59  ;;  %849 = vmatprep.mubr.f32.mxu1 %v3156_v0  ;;  %v1090_v30 = vsel %vm1087_vm13, %v2940_v19, %v2934_v6  ;;  %v1088_v32 = vsel %vm1087_vm13, %v2939_v22, %v2929_v1  ;;  %v1315_v52 = vsel %vm1311_vm15, %v2964_v46, %v2965_v45  ;;  %v1324_v1 = vld [vmem:[%s3756_s3 + $0x80] sm:$0xff] }
 0x192   : > { %2666 = vmatprep.subr.msk.bf16.mxu1 %vm3366_vm9, %v2664_v61  ;;  %v2948_v13 = vpop.permute.xlu1 %2947  ;;  %v2673_v36 = vpack.c.bf16 %v1090_v30, %v1088_v32  ;;  %v1189_v61 = vld [vmem:[%s3756_s3 + $0x70] sm:$0xff] }
 0x193   : > { %v2950_v23 = vunpack.i.h.bf16 %v2948_v13  ;;  %v2949_v24 = vunpack.i.l.bf16 %v2948_v13 }
 0x194   : > { %2560 = vmatmul.mubr.msk.f32.gmra.mrb[4].mxu1 %vm274_vm0, %v772_v2  ;;  %v1325_v2 = vld [vmem:[%s3756_s3 + $0x88] sm:$0xff] }
 0x195   : > { %932 = vmatprep.mubr.f32.mxu1 %v3156_v0  ;;  %v1207_v34 = vsel %vm1203_vm14, %v2949_v24, %v2950_v23  ;;  %v1206_v47 = vsel %vm1203_vm14, %v2955_v43, %v2949_v24 }
 0x196   : > { %v2958_v35 = vpop.permute.xlu1 %2957  ;;  %v2676_v39 = vpack.c.bf16 %v1207_v34, %v1205_v37  ;;  %v2678_v53 = vpack.c.bf16 %v1206_v47, %v1204_v51 }
 0x197   : > { %v2960_v40 = vunpack.i.h.bf16 %v2958_v35  ;;  %v2959_v41 = vunpack.i.l.bf16 %v2958_v35 }
 0x198   : > { %2561 = vmatmul.mubr.msk.f32.vlgmr.msra.gmra.mrb[2].mxu1 %vm274_vm0, %v860_v10 }
 0x199   : > { %2669 = vmatpush1.bf16.msk.msra.mxu1 %vm3373_vm11, %v2667_v15  ;;  %938 = vmatprep.mubr.f32.mxu1 %v3156_v0  ;;  %v1313_v48 = vsel %vm1311_vm15, %v2959_v41, %v2960_v40 }
 0x19a   : > { %2672 = vmatprep.subr.msk.bf16.mxu1 %vm3334_vm3, %v2670_v18  ;;  %v2968_v49 = vpop.permute.xlu1 %2967  ;;  %v2680_v54 = vpack.c.bf16 %v1315_v52, %v1313_v48 }
 0x19b   : > { %v2970_v55 = vunpack.i.h.bf16 %v2968_v49  ;;  %v2969_v56 = vunpack.i.l.bf16 %v2968_v49 }
 0x19c   : > { %2562 = vmatmul.mubr.msk.f32.gmra.mrb[4].mxu1 %vm274_vm0, %v861_v25 }
 0x19d   : > { %1058 = vmatprep.mubr.f32.mxu1 %v3156_v0  ;;  %v1314_v58 = vsel %vm1311_vm15, %v2970_v55, %v2964_v46  ;;  %v1312_v59 = vsel %vm1311_vm15, %v2969_v56, %v2959_v41 }
 0x19e   : > { %v2683_v62 = vpack.c.bf16 %v1314_v58, %v1312_v59 }
 0x19f   : > { %v1418_v3 = vpop.permute.xlu0 %1417 }
 0x1a0   : > { %2567 = vmatmul.mubr.msk.f32.vlgmr.msra.gmra.mrb[2].mxu1 %vm274_vm0, %v986_v33 }
 0x1a1   : > { %2675 = vmatpush1.bf16.msk.msra.mxu1 %vm3347_vm6, %v2673_v36  ;;  %1064 = vmatprep.mubr.f32.mxu1 %v3156_v0 }
 0x1a2   : > { %2677 = vmatprep.subr.bf16.mxu1 %v2676_v39 }
 0x1a4   : > { %2568 = vmatmul.mubr.msk.f32.gmra.mrb[4].mxu1 %vm274_vm0, %v987_v42 }
 0x1a5   : > { %1172 = vmatprep.mubr.f32.mxu1 %v3156_v0 }
 0x1a8   : > { %2573 = vmatmul.mubr.msk.f32.vlgmr.msra.gmra.mrb[2].mxu1 %vm274_vm0, %v1100_v50 }
 0x1a9   : > { %2679 = vmatpush1.bf16.msra.mxu1 %v2678_v53  ;;  %1178 = vmatprep.mubr.f32.mxu1 %v3156_v0 }
 0x1aa   : > { %2682 = vmatprep.subr.msk.bf16.mxu1 %vm3366_vm9, %v2680_v54  ;;  %v1479_v54 = vld [vmem:[%s3758_s5 + $0x10] sm:$0xff] }
 0x1ab   : > { %v1423_v8 = vpop.permute.xlu1 %1422 }
 0x1ac   : > { %2574 = vmatmul.mubr.msk.f32.gmra.mrb[4].mxu1 %vm274_vm0, %v1101_v57 }
 0x1ad   : > { %1282 = vmatprep.mubr.f32.mxu1 %v3156_v0 }
 0x1b0   : > { %2575 = vmatmul.mubr.msk.f32.vlgmr.msra.gmra.mrb[2].mxu1 %vm274_vm0, %v1189_v61 }
 0x1b1   : > { %2685 = vmatpush1.bf16.msk.msra.mxu1 %vm3373_vm11, %v2683_v62  ;;  %1288 = vmatprep.mubr.f32.mxu1 %v3156_v0 }
 0x1b4   : > { %2576 = vmatmul.mubr.msk.f32.gmra.mrb[4].mxu1 %vm274_vm0, %v1190_v63 }
 0x1b5   : > { %1396 = vmatprep.mubr.f32.mxu1 %v3156_v0 }
 0x1b8   : > { %2581 = vmatmul.mubr.msk.f32.vlgmr.msra.gmra.mrb[2].mxu1 %vm274_vm0, %v1324_v1 }
 0x1b9   : > { %1402 = vmatprep.mubr.f32.mxu1 %v3156_v0 }
 0x1bc   : > { %2582 = vmatmul.mubr.msk.f32.gmra.mrb[4].mxu1 %vm274_vm0, %v1325_v2  ;;  %v1480_v2 = vld [vmem:[%s3758_s5 + $0x18] sm:$0xff] }
 0x28b   : > { %v1398_v4 = vpop.f32.mrb[2].mxu1 }
 0x28c   : > { %v1425_v5 = vadd.f32 %v1418_v3, %v1398_v4  ;;  %v1400_v6 = vpop.f32.mrb[3].mxu1 }
 0x28d   : > { %v1426_v7 = vadd.f32 %v1418_v3, %v1400_v6 }
 0x28e   : > { %v3497_v9 = vmax.f32 %v1425_v5, 0.0 }
 0x28f   : > { %v3499_v10 = vmax.f32 %v1426_v7, 0.0  ;;  %v1404_v11 = vpop.f32.mrb[4].mxu1 }
 0x290   : > { %v1427_v13 = vadd.f32 %v1423_v8, %v1404_v11  ;;  %v1406_v14 = vpop.f32.mrb[5].mxu1 }
 0x291   : > { %v1428_v15 = vadd.f32 %v1423_v8, %v1406_v14  ;;  %v2972_v18 = vpack.i.bf16 %v3499_v10, %v3497_v9  ;;  %v3032_v28 = vpack.i.bf16 %v3156_v0, %v3499_v10 }
 0x292   : > { %v3503_v19 = vmax.f32 %v1427_v13, 0.0 }
 0x293   : > { %v3505_v22 = vmax.f32 %v1428_v15, 0.0  ;;  %2973 = vrot.lane.b32.xlu0 %v2972_v18, %s3158_s28 }
 0x294   : > { %v3042_v23 = vpack.i.bf16 %v3503_v19, %v3497_v9  ;;  %v2710_v26 = vpack.c.bf16 %v3503_v19, %v3497_v9 }
 0x295   : > { %v2977_v24 = vpack.i.bf16 %v3505_v22, %v3503_v19  ;;  %v2708_v25 = vpack.c.bf16 %v3505_v22, %v3499_v10  ;;  %v3037_v29 = vpack.i.bf16 %v3156_v0, %v3505_v22  ;;  %v1893_v19 = vld [vmem:[%s3758_s5 + $0x40] sm:$0xff] }
 0x297   : > { %2983 = vrot.lane.b32.xlu0 %v3156_v0, %s3158_s28  ;;  %2978 = vrot.lane.b32.xlu1 %v2977_v24, %s3158_s28 }
 0x29b   : > { %2993 = vrot.lane.b32.xlu0 %v2977_v24, %s3159_s29  ;;  %2988 = vrot.lane.b32.xlu1 %v2972_v18, %s3159_s29 }
 0x29f   : > { %3003 = vrot.lane.b32.xlu0 %v2972_v18, %s3160_s9  ;;  %2998 = vrot.lane.b32.xlu1 %v3156_v0, %s3159_s29 }
 0x2a3   : > { %3013 = vrot.lane.b32.xlu0 %v3156_v0, %s3160_s9  ;;  %3008 = vrot.lane.b32.xlu1 %v2977_v24, %s3160_s9  ;;  %s3709_s9 = scalar_lea.hbm %s3759_s6, %s2633_s18 }
 0x2a7   : > { %3023 = vrot.lane.b32.xlu0 %v2977_v24, %s3161_s10  ;;  %3018 = vrot.lane.b32.xlu1 %v2972_v18, %s3161_s10 }
 0x2ab   : > { %3033 = vrot.lane.b32.xlu0 %v3032_v28, %s3162_s11  ;;  %3028 = vrot.lane.b32.xlu1 %v3156_v0, %s3161_s10  ;;  %s3711_s10 = scalar_lea.sflag [#allocation5], %s245_s26 }
 0x2af   : > { %3043 = vrot.lane.b32.xlu0 %v3042_v23, %s3162_s11  ;;  %3038 = vrot.lane.b32.xlu1 %v3037_v29, %s3162_s11  ;;  %s3166_s11 = smov [#allocation4]  }
 0x2b3   : > { %3053 = vrot.lane.b32.xlu0 %v3037_v29, %s3163_s12  ;;  %3048 = vrot.lane.b32.xlu1 %v3032_v28, %s3163_s12 }
 0x2b7   : > { %3063 = vrot.lane.b32.xlu0 %v3032_v28, %s3164_s13  ;;  %3058 = vrot.lane.b32.xlu1 %v3042_v23, %s3163_s12  ;;  %s3096_s12 = sshll.u32 %s3166_s11, 4  ;;  %s3097_s12 = int_to_ptr.vmem [resolvable:$false] %s3096_s12 }
 0x2b8   : > { %p3099_p0 = scmp.lt.s32.totalorder %s3704_s17, %s3097_s12 }
 0x2bb   : > { %3073 = vrot.lane.b32.xlu0 %v3042_v23, %s3164_s13  ;;  %3068 = vrot.lane.b32.xlu1 %v3037_v29, %s3164_s13  ;;  %s3098_s13 = scalar_lea.vmem %s3097_s12, 1024 }
 0x2bc   : > { %p3100_p1 = scmp.lt.s32.totalorder %s3098_s13, %s3092_s25 }
 0x2be   : > { %p3101_p2 = por %p3100_p1, %p3099_p0 }
 0x2bf   : > { %3083 = vrot.lane.b32.xlu0 %v3037_v29, %s3165_s14  ;;  %3078 = vrot.lane.b32.xlu1 %v3032_v28, %s3165_s14 }
 0x2c0   : > { %p3102_p3 = pnand %p3101_p2, %p3095_p13 }
 0x2c3   : > { %3088 = vrot.lane.b32.xlu1 %v3042_v23, %s3165_s14  ;;  %v1477_v23 = vld [vmem:[%s3758_s5] sm:$0xff] }
 0x305   : > { %v2974_v30 = vpop.permute.xlu0 %2973 }
 0x306   : > { %v2976_v32 = vunpack.i.h.bf16 %v2974_v30  ;;  %v2975_v33 = vunpack.i.l.bf16 %v2974_v30 }
 0x308   : > { %v1494_v42 = vsel %vm274_vm0, %v2975_v33, %v2976_v32 }
 0x309   : > { %v2984_v34 = vpop.permute.xlu0 %2983  ;;  %v2979_v35 = vpop.permute.xlu1 %2978 }
 0x30a   : > { %v2986_v36 = vunpack.i.h.bf16 %v2984_v34  ;;  %v2985_v37 = vunpack.i.l.bf16 %v2984_v34  ;;  %v2981_v38 = vunpack.i.h.bf16 %v2979_v35  ;;  %v2980_v39 = vunpack.i.l.bf16 %v2979_v35 }
 0x30c   : > { %v1493_v40 = vsel %vm274_vm0, %v2985_v37, %v2975_v33  ;;  %v1495_v41 = vsel %vm274_vm0, %v2986_v36, %v2980_v39  ;;  %v1496_v43 = vsel %vm274_vm0, %v2980_v39, %v2981_v38  ;;  %v1478_v38 = vld [vmem:[%s3758_s5 + $0x8] sm:$0xff] }
 0x30d   : > { %v2688_v44 = vpack.c.bf16 %v1495_v41, %v1493_v40  ;;  %v2994_v45 = vpop.permute.xlu0 %2993  ;;  %v2989_v46 = vpop.permute.xlu1 %2988  ;;  %v2686_v47 = vpack.c.bf16 %v1496_v43, %v1494_v42 }
 0x30e   : > { %v2996_v48 = vunpack.i.h.bf16 %v2994_v45  ;;  %v2995_v49 = vunpack.i.l.bf16 %v2994_v45  ;;  %v2991_v50 = vunpack.i.h.bf16 %v2989_v46  ;;  %v2990_v51 = vunpack.i.l.bf16 %v2989_v46  ;;  %v1691_v46 = vld [vmem:[%s3758_s5 + $0x20] sm:$0xff] }
 0x30f   : > { %2687 = vmatprep.subr.bf16.mxu0 %v2686_v47 }
 0x310   : > { %v1468_v52 = vsel %vm429_vm1, %v2995_v49, %v2996_v48  ;;  %v1466_v53 = vsel %vm429_vm1, %v2990_v51, %v2991_v50  ;;  %2689 = vmatpush1.bf16.msra.mxu0 %v2688_v44 }
 0x311   : > { %v2690_v55 = vpack.c.bf16 %v1468_v52, %v1466_v53  ;;  %v3004_v56 = vpop.permute.xlu0 %3003  ;;  %v2999_v57 = vpop.permute.xlu1 %2998  ;;  %v1692_v52 = vld [vmem:[%s3758_s5 + $0x28] sm:$0xff] }
 0x312   : > { %v3001_v58 = vunpack.i.h.bf16 %v2999_v57  ;;  %v3000_v59 = vunpack.i.l.bf16 %v2999_v57  ;;  %v3006_v61 = vunpack.i.h.bf16 %v3004_v56  ;;  %v3005_v62 = vunpack.i.l.bf16 %v3004_v56 }
 0x313   : > { %2583 = vmatmul.mubr.msk.f32.vlgmr.msra.gmra.mrb[2].mxu0 %vm274_vm0, %v1479_v54  ;;  %2692 = vmatprep.subr.msk.bf16.mxu0 %vm3334_vm3, %v2690_v55 }
 0x314   : > { %v1467_v63 = vsel %vm429_vm1, %v3001_v58, %v2995_v49  ;;  %v1465_v1 = vsel %vm429_vm1, %v3000_v59, %v2990_v51  ;;  %1577 = vmatprep.mubr.f32.mxu0 %v3156_v0  ;;  %v1680_v13 = vsel %vm644_vm5, %v3005_v62, %v3006_v61  ;;  %v1804_v58 = vld [vmem:[%s3758_s5 + $0x30] sm:$0xff] }
 0x315   : > { %v2693_v3 = vpack.c.bf16 %v1467_v63, %v1465_v1  ;;  %v3014_v4 = vpop.permute.xlu0 %3013  ;;  %v3009_v5 = vpop.permute.xlu1 %3008 }
 0x316   : > { %v3016_v6 = vunpack.i.h.bf16 %v3014_v4  ;;  %v3015_v7 = vunpack.i.l.bf16 %v3014_v4  ;;  %v3011_v8 = vunpack.i.h.bf16 %v3009_v5  ;;  %v3010_v11 = vunpack.i.l.bf16 %v3009_v5 }
 0x317   : > { %2584 = vmatmul.mubr.msk.f32.gmra.mrb[4].mxu0 %vm274_vm0, %v1480_v2 }
 0x318   : > { %v1679_v14 = vsel %vm644_vm5, %v3015_v7, %v3005_v62  ;;  %v1681_v15 = vsel %vm644_vm5, %v3016_v6, %v3010_v11  ;;  %v1682_v18 = vsel %vm644_vm5, %v3010_v11, %v3011_v8  ;;  %2695 = vmatpush1.bf16.msk.msra.mxu0 %vm3347_vm6, %v2693_v3  ;;  %1654 = vmatprep.mubr.f32.mxu0 %v3156_v0  ;;  %v1805_v3 = vld [vmem:[%s3758_s5 + $0x38] sm:$0xff] }
 0x319   : > { %v2696_v24 = vpack.c.bf16 %v1682_v18, %v1680_v13  ;;  %v2699_v28 = vpack.c.bf16 %v1681_v15, %v1679_v14  ;;  %v3024_v29 = vpop.permute.xlu0 %3023  ;;  %v3019_v30 = vpop.permute.xlu1 %3018 }
 0x31a   : > { %v3026_v32 = vunpack.i.h.bf16 %v3024_v29  ;;  %v3025_v33 = vunpack.i.l.bf16 %v3024_v29  ;;  %v3021_v34 = vunpack.i.h.bf16 %v3019_v30  ;;  %v3020_v35 = vunpack.i.l.bf16 %v3019_v30 }
 0x31b   : > { %2589 = vmatmul.mubr.msk.f32.vlgmr.msra.gmra.mrb[2].mxu0 %vm274_vm0, %v1477_v23  ;;  %2698 = vmatprep.subr.msk.bf16.mxu0 %vm3366_vm9, %v2696_v24  ;;  %v1894_v24 = vld [vmem:[%s3758_s5 + $0x48] sm:$0xff] }
 0x31c   : > { %v1795_v36 = vsel %vm758_vm10, %v3025_v33, %v3026_v32  ;;  %v1793_v37 = vsel %vm758_vm10, %v3020_v35, %v3021_v34  ;;  %2701 = vmatpush1.bf16.msk.msra.mxu0 %vm3373_vm11, %v2699_v28  ;;  %1660 = vmatprep.mubr.f32.mxu0 %v3156_v0 }
 0x31d   : > { %v2702_v39 = vpack.c.bf16 %v1795_v36, %v1793_v37  ;;  %v3034_v40 = vpop.permute.xlu0 %3033  ;;  %v3029_v41 = vpop.permute.xlu1 %3028 }
 0x31e   : > { %v3031_v42 = vunpack.i.h.bf16 %v3029_v41  ;;  %v3030_v43 = vunpack.i.l.bf16 %v3029_v41  ;;  %v3036_v54 = vunpack.i.h.bf16 %v3034_v40  ;;  %v3035_v55 = vunpack.i.l.bf16 %v3034_v40 }
 0x31f   : > { %2590 = vmatmul.mubr.msk.f32.gmra.mrb[4].mxu0 %vm274_vm0, %v1478_v38  ;;  %2704 = vmatprep.subr.msk.bf16.mxu0 %vm3334_vm3, %v2702_v39 }
 0x320   : > { %v1794_v44 = vsel %vm758_vm10, %v3031_v42, %v3025_v33  ;;  %v1792_v45 = vsel %vm758_vm10, %v3030_v43, %v3020_v35  ;;  %1763 = vmatprep.mubr.f32.mxu0 %v3156_v0  ;;  %v2007_v59 = vsel %vm973_vm12, %v3035_v55, %v3036_v54  ;;  %v2018_v33 = vld [vmem:[%s3758_s5 + $0x50] sm:$0xff] }
 0x321   : > { %v2705_v47 = vpack.c.bf16 %v1794_v44, %v1792_v45  ;;  %v3044_v48 = vpop.permute.xlu0 %3043  ;;  %v3039_v49 = vpop.permute.xlu1 %3038  ;;  %v2019_v45 = vld [vmem:[%s3758_s5 + $0x58] sm:$0xff] }
 0x322   : > { %v3041_v50 = vunpack.i.h.bf16 %v3039_v49  ;;  %v3040_v51 = vunpack.i.l.bf16 %v3039_v49  ;;  %v3046_v61 = vunpack.i.h.bf16 %v3044_v48  ;;  %v3045_v62 = vunpack.i.l.bf16 %v3044_v48 }
 0x323   : > { %2595 = vmatmul.mubr.msk.f32.vlgmr.msra.gmra.mrb[2].mxu0 %vm274_vm0, %v1691_v46 }
 0x324   : > { %2707 = vmatpush1.bf16.msk.msra.mxu0 %vm3347_vm6, %v2705_v47  ;;  %1769 = vmatprep.mubr.f32.mxu0 %v3156_v0  ;;  %v2009_v57 = vsel %vm973_vm12, %v3040_v51, %v3041_v50  ;;  %v2006_v5 = vsel %vm973_vm12, %v3045_v62, %v3035_v55  ;;  %v2008_v6 = vsel %vm973_vm12, %v3046_v61, %v3040_v51  ;;  %v2132_v55 = vld [vmem:[%s3758_s5 + $0x68] sm:$0xff]  ;;  %v2353_v61 = vld [vmem:[%s3758_s5 + $0x80] sm:$0xff] }
 0x325   : > { %2709 = vmatprep.subr.bf16.mxu0 %v2708_v25  ;;  %v3049_v53 = vpop.permute.xlu1 %3048  ;;  %v3054_v56 = vpop.permute.xlu0 %3053  ;;  %v2712_v10 = vpack.c.bf16 %v2009_v57, %v2007_v59  ;;  %v2715_v8 = vpack.c.bf16 %v2008_v6, %v2006_v5 }
 0x326   : > { %v3056_v25 = vunpack.i.h.bf16 %v3054_v56  ;;  %v3055_v63 = vunpack.i.l.bf16 %v3054_v56  ;;  %v3051_v1 = vunpack.i.h.bf16 %v3049_v53  ;;  %v3050_v2 = vunpack.i.l.bf16 %v3049_v53 }
 0x327   : > { %2596 = vmatmul.mubr.msk.f32.gmra.mrb[4].mxu0 %vm274_vm0, %v1692_v52 }
 0x328   : > { %1876 = vmatprep.mubr.f32.mxu0 %v3156_v0  ;;  %v2122_v7 = vsel %vm1087_vm13, %v3055_v63, %v3056_v25  ;;  %v2120_v9 = vsel %vm1087_vm13, %v3050_v2, %v3051_v1 }
 0x329   : > { %v3059_v22 = vpop.permute.xlu1 %3058  ;;  %v3064_v4 = vpop.permute.xlu0 %3063  ;;  %v2718_v11 = vpack.c.bf16 %v2122_v7, %v2120_v9 }
 0x32a   : > { %v3061_v13 = vunpack.i.h.bf16 %v3059_v22  ;;  %v3060_v14 = vunpack.i.l.bf16 %v3059_v22  ;;  %v3066_v28 = vunpack.i.h.bf16 %v3064_v4  ;;  %v3065_v29 = vunpack.i.l.bf16 %v3064_v4 }
 0x32b   : > { %2601 = vmatmul.mubr.msk.f32.vlgmr.msra.gmra.mrb[2].mxu0 %vm274_vm0, %v1804_v58  ;;  %v2220_v58 = vld [vmem:[%s3758_s5 + $0x70] sm:$0xff] }
 0x32c   : > { %2711 = vmatpush1.bf16.msra.mxu0 %v2710_v26  ;;  %1882 = vmatprep.mubr.f32.mxu0 %v3156_v0  ;;  %v2121_v30 = vsel %vm1087_vm13, %v3061_v13, %v3055_v63  ;;  %v2119_v32 = vsel %vm1087_vm13, %v3060_v14, %v3050_v2  ;;  %v2235_v37 = vsel %vm1203_vm14, %v3065_v29, %v3066_v28 }
 0x32d   : > { %2714 = vmatprep.subr.msk.bf16.mxu0 %vm3366_vm9, %v2712_v10  ;;  %v3069_v26 = vpop.permute.xlu1 %3068  ;;  %v3074_v15 = vpop.permute.xlu0 %3073  ;;  %v2721_v60 = vpack.c.bf16 %v2121_v30, %v2119_v32 }
 0x32e   : > { %v3071_v18 = vunpack.i.h.bf16 %v3069_v26  ;;  %v3070_v23 = vunpack.i.l.bf16 %v3069_v26  ;;  %v3076_v38 = vunpack.i.h.bf16 %v3074_v15  ;;  %v3075_v39 = vunpack.i.l.bf16 %v3074_v15 }
 0x32f   : > { %2602 = vmatmul.mubr.msk.f32.gmra.mrb[4].mxu0 %vm274_vm0, %v1805_v3 }
 0x330   : > { %1965 = vmatprep.mubr.f32.mxu0 %v3156_v0  ;;  %v2237_v34 = vsel %vm1203_vm14, %v3070_v23, %v3071_v18  ;;  %v2234_v46 = vsel %vm1203_vm14, %v3075_v39, %v3065_v29  ;;  %v2236_v47 = vsel %vm1203_vm14, %v3076_v38, %v3070_v23 }
 0x331   : > { %v3084_v35 = vpop.permute.xlu0 %3083  ;;  %v3079_v36 = vpop.permute.xlu1 %3078  ;;  %v2724_v40 = vpack.c.bf16 %v2237_v34, %v2235_v37  ;;  %v2726_v51 = vpack.c.bf16 %v2236_v47, %v2234_v46 }
 0x332   : > { %v3086_v41 = vunpack.i.h.bf16 %v3084_v35  ;;  %v3085_v42 = vunpack.i.l.bf16 %v3084_v35  ;;  %v3081_v43 = vunpack.i.h.bf16 %v3079_v36  ;;  %v3080_v44 = vunpack.i.l.bf16 %v3079_v36 }
 0x333   : > { %2603 = vmatmul.mubr.msk.f32.vlgmr.msra.gmra.mrb[2].mxu0 %vm274_vm0, %v1893_v19 }
 0x334   : > { %2717 = vmatpush1.bf16.msk.msra.mxu0 %vm3373_vm11, %v2715_v8  ;;  %1971 = vmatprep.mubr.f32.mxu0 %v3156_v0  ;;  %v2344_v48 = vsel %vm1311_vm15, %v3085_v42, %v3086_v41  ;;  %v2342_v49 = vsel %vm1311_vm15, %v3080_v44, %v3081_v43 }
 0x335   : > { %2720 = vmatprep.subr.msk.bf16.mxu0 %vm3334_vm3, %v2718_v11  ;;  %v3089_v50 = vpop.permute.xlu1 %3088  ;;  %v2728_v52 = vpack.c.bf16 %v2344_v48, %v2342_v49 }
 0x336   : > { %v3091_v53 = vunpack.i.h.bf16 %v3089_v50  ;;  %v3090_v54 = vunpack.i.l.bf16 %v3089_v50 }
 0x337   : > { %2604 = vmatmul.mubr.msk.f32.gmra.mrb[4].mxu0 %vm274_vm0, %v1894_v24 }
 0x338   : > { %2090 = vmatprep.mubr.f32.mxu0 %v3156_v0  ;;  %v2343_v56 = vsel %vm1311_vm15, %v3091_v53, %v3085_v42  ;;  %v2341_v57 = vsel %vm1311_vm15, %v3090_v54, %v3080_v44 }
 0x339   : > { %v2731_v59 = vpack.c.bf16 %v2343_v56, %v2341_v57 }
 0x33b   : > { %2609 = vmatmul.mubr.msk.f32.vlgmr.msra.gmra.mrb[2].mxu0 %vm274_vm0, %v2018_v33 }
 0x33c   : > { %2723 = vmatpush1.bf16.msk.msra.mxu0 %vm3347_vm6, %v2721_v60  ;;  %2096 = vmatprep.mubr.f32.mxu0 %v3156_v0 }
 0x33d   : > { %2725 = vmatprep.subr.bf16.mxu0 %v2724_v40 }
 0x33f   : > { %2610 = vmatmul.mubr.msk.f32.gmra.mrb[4].mxu0 %vm274_vm0, %v2019_v45 }
 0x340   : > { %2203 = vmatprep.mubr.f32.mxu0 %v3156_v0 }
 0x343   : > { %2615 = vmatmul.mubr.msk.f32.vlgmr.msra.gmra.mrb[2].mxu0 %vm274_vm0, %v2131_v12 }
 0x344   : > { %2727 = vmatpush1.bf16.msra.mxu0 %v2726_v51  ;;  %2209 = vmatprep.mubr.f32.mxu0 %v3156_v0 }
 0x345   : > { %2730 = vmatprep.subr.msk.bf16.mxu0 %vm3366_vm9, %v2728_v52 }
 0x347   : > { %2616 = vmatmul.mubr.msk.f32.gmra.mrb[4].mxu0 %vm274_vm0, %v2132_v55 }
 0x348   : > { %2312 = vmatprep.mubr.f32.mxu0 %v3156_v0 }
 0x34b   : > { %2617 = vmatmul.mubr.msk.f32.vlgmr.msra.gmra.mrb[2].mxu0 %vm274_vm0, %v2220_v58 }
 0x34c   : > { %2733 = vmatpush1.bf16.msk.msra.mxu0 %vm3373_vm11, %v2731_v59  ;;  %2318 = vmatprep.mubr.f32.mxu0 %v3156_v0 }
 0x34f   : > { %2618 = vmatmul.mubr.msk.f32.gmra.mrb[4].mxu0 %vm274_vm0, %v2221_v27 }
 0x350   : > { %2425 = vmatprep.mubr.f32.mxu0 %v3156_v0 }
 0x353   : > { %2623 = vmatmul.mubr.msk.f32.vlgmr.msra.gmra.mrb[2].mxu0 %vm274_vm0, %v2353_v61 }
 0x354   : > { %2431 = vmatprep.mubr.f32.mxu0 %v3156_v0 }
 0x357   : > { %2624 = vmatmul.mubr.msk.f32.gmra.mrb[4].mxu0 %vm274_vm0, %v2354_v31 }
 0x426   : > { %v2427_v62 = vpop.f32.mrb[2].mxu0 }
 0x427   : > { %v2442_v10 = vadd.f32 %v2427_v62, %v3275_v16  ;;  %v2429_v22 = vpop.f32.mrb[3].mxu0 }
 0x428   : > { %v2443_v25 = vadd.f32 %v2429_v22, %v3279_v20 }
 0x429   : > { %v2446_v63 = vmax.f32 %v2442_v10, 0.0 }
 0x42a   : > { %v2447_v1 = vmax.f32 %v2443_v25, 0.0  ;;  %v2433_v0 = vpop.f32.mrb[4].mxu0 }
 0x42b   : > { %2450 = vst [vmem:[%s247_s16] sm:$0xff] %v2446_v63  ;;  %v2444_v2 = vadd.f32 %v2433_v0, %v3277_v17  ;;  %v2435_v3 = vpop.f32.mrb[5].mxu0 }
 0x42c   : > { %2451 = vst [vmem:[%s247_s16 + $0x8] sm:$0xff] %v2447_v1  ;;  %v2445_v4 = vadd.f32 %v2435_v3, %v3281_v21 }
 0x42d   : > { %v2448_v16 = vmax.f32 %v2444_v2, 0.0 }
 0x42e   : > { %v2449_v20 = vmax.f32 %v2445_v4, 0.0 }
 0x42f   : > { %2452 = vst [vmem:[%s247_s16 + $0x10] sm:$0xff] %v2448_v16 }
 0x430   : > { %2453 = vst [vmem:[%s247_s16 + $0x18] sm:$0xff] %v2449_v20 }
 0x431   : > { %3105 = shalt.err (!%p3102_p3)
}
 0x432   : > { %s3106_s14 = scalar_lea.hbm %s3709_s9, 512  ;;  %s3110_s15 = scalar_lea.hbm %s3759_s6, 1024 }
 0x433   : > { %p3107_p4 = scmp.ne.s32.totalorder %s3709_s9, %s3106_s14  ;;  %p3111_p9 = scmp.lt.u32.totalorder %s3709_s9, %s3759_s6 }
 0x434   : > { %p3112_p10 = scmp.lt.u32.totalorder %s3110_s15, %s3106_s14  ;;  %p3114_p12 = scmp.lt.u32.totalorder %s3106_s14, %s3709_s9 }
 0x435   : > { %p3108_p7 = pnand %p3107_p4, %p3241_p5 }
 0x436   : > { %p3113_p11 = por %p3112_p10, %p3111_p9 }
 0x437   : > { %p3109_p8 = pneg %p3108_p7 }
 0x438   : > { %p3115_p13 = por %p3114_p12, %p3113_p11 }
 0x43a   : > { %p3116_p0 = pnand %p3115_p13, %p3109_p8 }
 0x43c   : > { %3119 = shalt.err (!%p3116_p0)
}
 0x43d   : > { %s3167_s19 = smov 256  }
 0x43e   : > { %2800 = dma.vmem_to_hbm [thread:$0]  (%p3241_p5), %s3704_s17, 512, %s3709_s9, %s3711_s10, %s3167_s19, %s3167_s19, %s3158_s28  }
 0x43f PF: > { %p2806_p1 = scmp.ge.s32.totalorder %s3154_s24, 2  ;;  %s2484_s29 = sand.u32 1, %s3142_s21  }
 0x440   : > { %s2485_s25 = scalar_lea.sflag [#allocation5], %s2484_s29 }
 0x441   : > { %p2803_p2 = pnand %p2806_p1, %p3245_p6 }
 0x443   : > { %3137 = dma.done.wait (!%p2803_p2), %s2485_s25, 512  }
 0x444   : > { %3139 = vsyncadd (!%p2803_p2), %s2485_s25, 4294966784  ;;  %p16_p3 = scmp.ge.s32.totalorder %s3228_s27, 4   ;;  %s3772_s21 = smov %s3146_s22 }
 0x445   : > { %s3773_s22 = smov %s3150_s23  ;;  %s3774_s23 = smov %s3239_s30 }
 0x446   : > { %s3775_s24 = smov %s3228_s27  ;;  %18 = sbr.rel (!%p16_p3) target bundleno = 3 (0x3), region = 79 }
 0x44d   :  { %2490 = vsyncpa [#allocation5], 1 }
 0x44e   :  { %2492 = vsyncpa [#allocation5 + $0x1], 1 }

</bundles_post_ra>
